<compile_context>
chip_gen: v7x
topology: tpu7x:2x2x1
jax: 0.10.0
libtpu: 0.0.40
codegen_flags: <defaults>
</compile_context>

<pallas_src>
import functools

import jax
import jax.numpy as jnp
import numpy as np
from jax.experimental import pallas as pl
from jax.experimental.pallas import tpu as pltpu


# ------------------------------ fused kernel ------------------------------- #

def _lenet_kernel(x_ref, B1_ref, b1_ref, B2_ref, b2_ref, W1p_ref, fb1_ref,
                  W2_ref, fb2_ref, W3_ref, fb3_ref, out_ref,
                  s_x, s_a, s_b, *, TB):
    """Whole LeNet forward for TB samples.

    Row layout: r = b*32 + h  (b = sample within block, h = image row).
    conv1 output lanes: dw*128 + co*16 + pw   (ow = 2*pw + dw)
    conv2 output lanes: dq*128 + c2*8  + q    (ow2 = 2*q + dq)
    """
    f32 = jnp.float32
    R = TB * 32

    # Zero the 8 shift-padding rows (main regions are fully written below
    # before they are read, so only the pad rows need initialization).
    s_x[pl.ds(R, 8), :] = jnp.zeros((8, 32), f32)
    s_a[pl.ds(R, 8), :] = jnp.zeros((8, 128), f32)
    s_b[pl.ds(R, 8), :] = jnp.zeros((8, 128), f32)

    # ---- conv1: 5 banded matmuls (one per kernel row) -----------------------
    s_x[pl.ds(0, R), :] = x_ref[...]
    y1 = jnp.dot(s_x[pl.ds(0, R), :], B1_ref[0], preferred_element_type=f32)
    for i in range(1, 5):
        y1 = y1 + jnp.dot(s_x[pl.ds(i, R), :], B1_ref[i],
                          preferred_element_type=f32)
    a1 = jnp.maximum(y1 + b1_ref[...], 0.0)              # bias + ReLU
    wp1 = jnp.maximum(a1[:, :128], a1[:, 128:])          # width pool (phases)
    s_a[pl.ds(0, R), :] = wp1
    p1 = jnp.maximum(wp1, s_a[pl.ds(1, R), :])           # height pool (+1 row)
    s_a[pl.ds(0, R), :] = p1                             # pooled map, rows b*32+2*ph

    # ---- conv2: 5 banded matmuls, input rows are spread by 2 ----------------
    y2 = jnp.dot(s_a[pl.ds(0, R), :], B2_ref[0], preferred_element_type=f32)
    for i in range(1, 5):
        y2 = y2 + jnp.dot(s_a[pl.ds(2 * i, R), :], B2_ref[i],
                          preferred_element_type=f32)
    a2 = jnp.maximum(y2 + b2_ref[...], 0.0)
    wp2 = jnp.maximum(a2[:, :128], a2[:, 128:])          # width pool
    s_b[pl.ds(0, R), :] = wp2
    p2 = jnp.maximum(wp2, s_b[pl.ds(2, R), :])           # height pool (+2 rows)
    # pooled conv2 features now sit at rows b*32 + 4*p, lanes c2*8 + q

    # ---- pooled-row gather (selection matmuls) + fc1 / fc2 / fc3 ------------
    row_ids = jax.lax.broadcasted_iota(jnp.int32, (TB, R), 0)
    col_ids = jax.lax.broadcasted_iota(jnp.int32, (TB, R), 1)
    h1 = None
    for p in range(5):
        sel = (col_ids == row_ids * 32 + 4 * p).astype(f32)      # (TB, R)
        hp = jnp.dot(sel, p2, preferred_element_type=f32)        # rows b*32+4p
        term = jnp.dot(hp, W1p_ref[p], preferred_element_type=f32)
        h1 = term if h1 is None else h1 + term
    h1 = jnp.maximum(h1 + fb1_ref[...], 0.0)                     # fc1 + ReLU
    h2 = jnp.maximum(jnp.dot(h1, W2_ref[...], preferred_element_type=f32)
                     + fb2_ref[...], 0.0)                        # fc2 + ReLU
    out = jnp.dot(h2, W3_ref[...], preferred_element_type=f32) + fb3_ref[...]
    out_ref[...] = out.astype(out_ref.dtype)


# -------------------------- weight packing (one-time) ----------------------- #

def init_params(key):
    """PyTorch-default-style U(-1/sqrt(fan_in), +1/sqrt(fan_in)) init."""
    ks = jax.random.split(key, 10)

    def u(k, shape, fan_in):
        bound = 1.0 / float(fan_in) ** 0.5
        return jax.random.uniform(k, shape, jnp.float32, -bound, bound)

    return {
        "conv1_w": u(ks[0], (5, 5, 1, 6), 25),
        "conv1_b": u(ks[1], (6,), 25),
        "conv2_w": u(ks[2], (5, 5, 6, 16), 150),
        "conv2_b": u(ks[3], (16,), 150),
        "fc1_w": u(ks[4], (400, 120), 400),
        "fc1_b": u(ks[5], (120,), 400),
        "fc2_w": u(ks[6], (120, 84), 120),
        "fc2_b": u(ks[7], (84,), 120),
        "fc3_w": u(ks[8], (84, 10), 84),
        "fc3_b": u(ks[9], (10,), 84),
    }


def pack_params(params):
    """One-time repack of LeNet weights into lane-dense banded MXU matrices."""
    f32 = jnp.float32
    w1 = params["conv1_w"].astype(f32)[:, :, 0, :]     # (5, 5, 6)
    w2 = params["conv2_w"].astype(f32)                 # (5, 5, 6, 16)
    fc1_w = params["fc1_w"].astype(f32)

    # conv1 band: B1[i, w, dw*128 + co*16 + pw] = w1[i, w - (2*pw + dw), co]
    i_idx = np.arange(5)[:, None, None]
    w_idx = np.arange(32)[None, :, None]
    n_idx = np.arange(256)[None, None, :]
    dw = n_idx // 128
    co = (n_idx % 128) // 16
    pw = n_idx % 16
    j = w_idx - 2 * pw - dw
    valid = (j >= 0) & (j < 5) & (co < 6) & (pw < 14)
    B1 = jnp.where(valid, w1[i_idx, np.clip(j, 0, 4), np.clip(co, 0, 5)], 0.0)

    nn = np.arange(256)
    co_b = (nn % 128) // 16
    b1row = jnp.where(co_b < 6,
                      params["conv1_b"].astype(f32)[np.clip(co_b, 0, 5)],
                      0.0).reshape(1, 256)

    # conv2 band: B2[i, ci*16 + w, dq*128 + c2*8 + q] = w2[i, w-(2q+dq), ci, c2]
    l_idx = np.arange(128)[None, :, None]
    n_idx = np.arange(256)[None, None, :]
    ci = l_idx // 16
    w = l_idx % 16
    dq = n_idx // 128
    c2 = (n_idx % 128) // 8
    q = n_idx % 8
    j = w - 2 * q - dq
    valid = (j >= 0) & (j < 5) & (ci < 6) & (q < 5)
    B2 = jnp.where(valid,
                   w2[i_idx, np.clip(j, 0, 4), np.clip(ci, 0, 5), c2], 0.0)

    c2_b = (nn % 128) // 8
    b2row = params["conv2_b"].astype(f32)[c2_b].reshape(1, 256)

    # fc1 split by pooled-row phase p (torch flatten order c2*25 + p*5 + q):
    p_idx = np.arange(5)[:, None, None]
    l_idx = np.arange(128)[None, :, None]
    n_idx = np.arange(128)[None, None, :]
    c2 = l_idx // 8
    q = l_idx % 8
    f = c2 * 25 + p_idx * 5 + q
    valid = (q < 5) & (n_idx < 120)
    W1p = jnp.where(valid,
                    fc1_w[np.clip(f, 0, 399), np.clip(n_idx, 0, 119)], 0.0)

    fb1 = jnp.zeros((1, 128), f32).at[0, :120].set(params["fc1_b"].astype(f32))
    W2 = jnp.zeros((128, 128), f32).at[:120, :84].set(params["fc2_w"].astype(f32))
    fb2 = jnp.zeros((1, 128), f32).at[0, :84].set(params["fc2_b"].astype(f32))
    W3 = jnp.zeros((128, 128), f32).at[:84, :10].set(params["fc3_w"].astype(f32))
    fb3 = jnp.zeros((1, 128), f32).at[0, :10].set(params["fc3_b"].astype(f32))

    return {"B1": B1.astype(f32), "b1row": b1row, "B2": B2.astype(f32),
            "b2row": b2row, "W1p": W1p.astype(f32), "fb1": fb1,
            "W2": W2, "fb2": fb2, "W3": W3, "fb3": fb3}


# --------------------------------- forward ---------------------------------- #

def net_forward(packed, x_nchw):
    """Net.forward equivalent: x_nchw (B, 1, 32, 32) f32 -> (B, 10) f32."""
    B = x_nchw.shape[0]
    assert x_nchw.shape[1:] == (1, 32, 32)
    TB = B if B <= 8 else 8                       # samples per grid step
    Bp = ((B + TB - 1) // TB) * TB
    R = TB * 32
    n_blocks = Bp // TB

    x2d = x_nchw.reshape(B, 32, 32).astype(jnp.float32)   # Cin==1: free reshape
    if Bp != B:
        x2d = jnp.pad(x2d, ((0, Bp - B), (0, 0), (0, 0)))
    x2d = x2d.reshape(Bp * 32, 32)

    flops = 2 * n_blocks * (5 * R * 32 * 256 + 5 * R * 128 * 256
                            + 5 * TB * R * 128 + 7 * TB * 128 * 128)
    weight_bytes = 4 * (5 * 32 * 256 + 5 * 128 * 256 + 5 * 128 * 128
                        + 2 * 128 * 128 + 2 * 256 + 3 * 128)
    bytes_accessed = int(x2d.size * 4 + Bp * 128 * 4 + weight_bytes)

    out = pl.pallas_call(
        functools.partial(_lenet_kernel, TB=TB),
        out_shape=jax.ShapeDtypeStruct((Bp, 128), jnp.float32),
        grid=(n_blocks,),
        in_specs=[
            pl.BlockSpec((R, 32), lambda g: (g, 0)),
            pl.BlockSpec((5, 32, 256), lambda g: (0, 0, 0)),
            pl.BlockSpec((1, 256), lambda g: (0, 0)),
            pl.BlockSpec((5, 128, 256), lambda g: (0, 0, 0)),
            pl.BlockSpec((1, 256), lambda g: (0, 0)),
            pl.BlockSpec((5, 128, 128), lambda g: (0, 0, 0)),
            pl.BlockSpec((1, 128), lambda g: (0, 0)),
            pl.BlockSpec((128, 128), lambda g: (0, 0)),
            pl.BlockSpec((1, 128), lambda g: (0, 0)),
            pl.BlockSpec((128, 128), lambda g: (0, 0)),
            pl.BlockSpec((1, 128), lambda g: (0, 0)),
        ],
        out_specs=pl.BlockSpec((TB, 128), lambda g: (g, 0)),
        scratch_shapes=[
            pltpu.VMEM((R + 8, 32), jnp.float32),    # shifted input reads
            pltpu.VMEM((R + 8, 128), jnp.float32),   # pool1 / conv2 taps
            pltpu.VMEM((R + 8, 128), jnp.float32),   # pool2
        ],
        compiler_params=pltpu.CompilerParams(
            dimension_semantics=("parallel",),
            vmem_limit_bytes=32 * 1024 * 1024,
        ),
        cost_estimate=pl.CostEstimate(flops=int(flops), transcendentals=0,
                                      bytes_accessed=bytes_accessed),
    )(x2d, packed["B1"], packed["b1row"], packed["B2"], packed["b2row"],
      packed["W1p"], packed["fb1"], packed["W2"], packed["fb2"],
      packed["W3"], packed["fb3"])

    return out[:B, :10]


# ------------------------------ pure-JAX reference -------------------------- #

def reference_forward(params, x_nchw):
    x = jnp.transpose(x_nchw, (0, 2, 3, 1)).astype(jnp.float32)

    def conv(v, w, b):
        y = jax.lax.conv_general_dilated(
            v, w, window_strides=(1, 1), padding="VALID",
            dimension_numbers=("NHWC", "HWIO", "NHWC"))
        return jax.nn.relu(y + b)

    def pool(v):
        return jax.lax.reduce_window(v, -jnp.inf, jax.lax.max,
                                     (1, 2, 2, 1), (1, 2, 2, 1), "VALID")

    y = pool(conv(x, params["conv1_w"], params["conv1_b"]))
    y = pool(conv(y, params["conv2_w"], params["conv2_b"]))
    B = x.shape[0]
    y = jnp.transpose(y, (0, 3, 1, 2)).reshape(B, 16 * 5 * 5)
    y = jax.nn.relu(y @ params["fc1_w"] + params["fc1_b"])
    y = jax.nn.relu(y @ params["fc2_w"] + params["fc2_b"])
    return y @ params["fc3_w"] + params["fc3_b"]


if __name__ == "__main__":
    key = jax.random.PRNGKey(0)
    pkey, xkey = jax.random.split(key)
    params = init_params(pkey)
    packed = pack_params(params)           # one-time weight repack (off hot path)

    # PyTorch-convention NCHW input: batch=2, 1 channel, 32x32 (required by fc1).
    x = jax.random.normal(xkey, (2, 1, 32, 32), jnp.float32)

    fwd = jax.jit(net_forward)
    out = jax.block_until_ready(fwd(packed, x))
    assert out.shape == (2, 10) and out.dtype == jnp.float32

    ref = jax.block_until_ready(jax.jit(reference_forward)(params, x))
    if not bool(jnp.allclose(out, ref, rtol=1e-3, atol=1e-3)):
        raise AssertionError(
            "Pallas kernel mismatch vs reference (max abs err "
            f"{float(jnp.max(jnp.abs(out - ref))):.3e})")
    print("KERNEL_OK")
</pallas_src>

<mosaic_0001>
module attributes {stable_mosaic.version = 11 : i64} {
  func.func @_lenet_kernel(%arg0: i32, %arg1: memref<64x32xf32, #tpu.memory_space<vmem>>, %arg2: memref<5x32x256xf32, #tpu.memory_space<vmem>>, %arg3: memref<1x256xf32, #tpu.memory_space<vmem>>, %arg4: memref<5x128x256xf32, #tpu.memory_space<vmem>>, %arg5: memref<1x256xf32, #tpu.memory_space<vmem>>, %arg6: memref<5x128x128xf32, #tpu.memory_space<vmem>>, %arg7: memref<1x128xf32, #tpu.memory_space<vmem>>, %arg8: memref<128x128xf32, #tpu.memory_space<vmem>>, %arg9: memref<1x128xf32, #tpu.memory_space<vmem>>, %arg10: memref<128x128xf32, #tpu.memory_space<vmem>>, %arg11: memref<1x128xf32, #tpu.memory_space<vmem>>, %arg12: memref<2x128xf32, #tpu.memory_space<vmem>>, %arg13: memref<72x32xf32, #tpu.memory_space<vmem>>, %arg14: memref<72x128xf32, #tpu.memory_space<vmem>>, %arg15: memref<72x128xf32, #tpu.memory_space<vmem>>) attributes {dimension_semantics = [#tpu.dimension_semantics<parallel>], iteration_bounds = array<i64: 1>, scalar_prefetch = 0 : i64, scratch_operands = 3 : i64, tpu.core_type = #tpu.core_type<tc>, window_params = [{transform_indices = @transform_0, window_bounds = array<i64: 64, 32>}, {pipeline_mode = #tpu.pipeline_mode<synchronous>, transform_indices = @transform_1, window_bounds = array<i64: 5, 32, 256>}, {pipeline_mode = #tpu.pipeline_mode<synchronous>, transform_indices = @transform_2, window_bounds = array<i64: 1, 256>}, {pipeline_mode = #tpu.pipeline_mode<synchronous>, transform_indices = @transform_3, window_bounds = array<i64: 5, 128, 256>}, {pipeline_mode = #tpu.pipeline_mode<synchronous>, transform_indices = @transform_4, window_bounds = array<i64: 1, 256>}, {pipeline_mode = #tpu.pipeline_mode<synchronous>, transform_indices = @transform_5, window_bounds = array<i64: 5, 128, 128>}, {pipeline_mode = #tpu.pipeline_mode<synchronous>, transform_indices = @transform_6, window_bounds = array<i64: 1, 128>}, {pipeline_mode = #tpu.pipeline_mode<synchronous>, transform_indices = @transform_7, window_bounds = array<i64: 128, 128>}, {pipeline_mode = #tpu.pipeline_mode<synchronous>, transform_indices = @transform_8, window_bounds = array<i64: 1, 128>}, {pipeline_mode = #tpu.pipeline_mode<synchronous>, transform_indices = @transform_9, window_bounds = array<i64: 128, 128>}, {pipeline_mode = #tpu.pipeline_mode<synchronous>, transform_indices = @transform_10, window_bounds = array<i64: 1, 128>}, {transform_indices = @transform_11, window_bounds = array<i64: 2, 128>}]} {
    %cst = arith.constant 0.000000e+00 : f32
    %0 = vector.broadcast %cst : f32 to vector<8x32xf32>
    %c64 = arith.constant 64 : index
    %c0 = arith.constant 0 : index
    %1 = vector.load %arg13[%c64, %c0] : memref<72x32xf32, #tpu.memory_space<vmem>>, vector<8x32xf32>
    tpu.vector_store %arg13[%c64, %c0], %0 {strides = array<i32>} : memref<72x32xf32, #tpu.memory_space<vmem>>, vector<8x32xf32>,
    %cst_0 = arith.constant 0.000000e+00 : f32
    %2 = vector.broadcast %cst_0 : f32 to vector<8x128xf32>
    %c64_1 = arith.constant 64 : index
    %c0_2 = arith.constant 0 : index
    %3 = vector.load %arg14[%c64_1, %c0_2] : memref<72x128xf32, #tpu.memory_space<vmem>>, vector<8x128xf32>
    tpu.vector_store %arg14[%c64_1, %c0_2], %2 {strides = array<i32>} : memref<72x128xf32, #tpu.memory_space<vmem>>, vector<8x128xf32>,
    %cst_3 = arith.constant 0.000000e+00 : f32
    %4 = vector.broadcast %cst_3 : f32 to vector<8x128xf32>
    %c64_4 = arith.constant 64 : index
    %c0_5 = arith.constant 0 : index
    %5 = vector.load %arg15[%c64_4, %c0_5] : memref<72x128xf32, #tpu.memory_space<vmem>>, vector<8x128xf32>
    tpu.vector_store %arg15[%c64_4, %c0_5], %4 {strides = array<i32>} : memref<72x128xf32, #tpu.memory_space<vmem>>, vector<8x128xf32>,
    %c0_6 = arith.constant 0 : index
    %c0_7 = arith.constant 0 : index
    %6 = vector.load %arg1[%c0_6, %c0_7] : memref<64x32xf32, #tpu.memory_space<vmem>>, vector<64x32xf32>
    %c0_8 = arith.constant 0 : index
    %c0_9 = arith.constant 0 : index
    %7 = vector.load %arg13[%c0_8, %c0_9] : memref<72x32xf32, #tpu.memory_space<vmem>>, vector<64x32xf32>
    tpu.vector_store %arg13[%c0_8, %c0_9], %6 {strides = array<i32>} : memref<72x32xf32, #tpu.memory_space<vmem>>, vector<64x32xf32>,
    %c0_10 = arith.constant 0 : index
    %c0_11 = arith.constant 0 : index
    %8 = vector.load %arg13[%c0_10, %c0_11] : memref<72x32xf32, #tpu.memory_space<vmem>>, vector<64x32xf32>
    %c0_12 = arith.constant 0 : index
    %c0_13 = arith.constant 0 : index
    %c0_14 = arith.constant 0 : index
    %9 = vector.load %arg2[%c0_12, %c0_13, %c0_14] : memref<5x32x256xf32, #tpu.memory_space<vmem>>, vector<1x32x256xf32>
    %10 = vector.shape_cast %9 : vector<1x32x256xf32> to vector<32x256xf32>
    %cst_15 = arith.constant dense<0.000000e+00> : vector<64x256xf32>
    %11 = tpu.matmul %8, %10, %cst_15 {dimension_numbers = #tpu.dot_dimension_numbers<[1], [0], [0], [1], [0, 0, 1, 1], [], []>} : vector<64x32xf32>, vector<32x256xf32>, vector<64x256xf32> -> vector<64x256xf32>
    %c1 = arith.constant 1 : index
    %c0_16 = arith.constant 0 : index
    %12 = vector.load %arg13[%c1, %c0_16] : memref<72x32xf32, #tpu.memory_space<vmem>>, vector<64x32xf32>
    %c1_17 = arith.constant 1 : index
    %c0_18 = arith.constant 0 : index
    %c0_19 = arith.constant 0 : index
    %13 = vector.load %arg2[%c1_17, %c0_18, %c0_19] : memref<5x32x256xf32, #tpu.memory_space<vmem>>, vector<1x32x256xf32>
    %14 = vector.shape_cast %13 : vector<1x32x256xf32> to vector<32x256xf32>
    %cst_20 = arith.constant dense<0.000000e+00> : vector<64x256xf32>
    %15 = tpu.matmul %12, %14, %cst_20 {dimension_numbers = #tpu.dot_dimension_numbers<[1], [0], [0], [1], [0, 0, 1, 1], [], []>} : vector<64x32xf32>, vector<32x256xf32>, vector<64x256xf32> -> vector<64x256xf32>
    %16 = arith.addf %11, %15 : vector<64x256xf32>
    %c2 = arith.constant 2 : index
    %c0_21 = arith.constant 0 : index
    %17 = vector.load %arg13[%c2, %c0_21] : memref<72x32xf32, #tpu.memory_space<vmem>>, vector<64x32xf32>
    %c2_22 = arith.constant 2 : index
    %c0_23 = arith.constant 0 : index
    %c0_24 = arith.constant 0 : index
    %18 = vector.load %arg2[%c2_22, %c0_23, %c0_24] : memref<5x32x256xf32, #tpu.memory_space<vmem>>, vector<1x32x256xf32>
    %19 = vector.shape_cast %18 : vector<1x32x256xf32> to vector<32x256xf32>
    %cst_25 = arith.constant dense<0.000000e+00> : vector<64x256xf32>
    %20 = tpu.matmul %17, %19, %cst_25 {dimension_numbers = #tpu.dot_dimension_numbers<[1], [0], [0], [1], [0, 0, 1, 1], [], []>} : vector<64x32xf32>, vector<32x256xf32>, vector<64x256xf32> -> vector<64x256xf32>
    %21 = arith.addf %16, %20 : vector<64x256xf32>
    %c3 = arith.constant 3 : index
    %c0_26 = arith.constant 0 : index
    %22 = vector.load %arg13[%c3, %c0_26] : memref<72x32xf32, #tpu.memory_space<vmem>>, vector<64x32xf32>
    %c3_27 = arith.constant 3 : index
    %c0_28 = arith.constant 0 : index
    %c0_29 = arith.constant 0 : index
    %23 = vector.load %arg2[%c3_27, %c0_28, %c0_29] : memref<5x32x256xf32, #tpu.memory_space<vmem>>, vector<1x32x256xf32>
    %24 = vector.shape_cast %23 : vector<1x32x256xf32> to vector<32x256xf32>
    %cst_30 = arith.constant dense<0.000000e+00> : vector<64x256xf32>
    %25 = tpu.matmul %22, %24, %cst_30 {dimension_numbers = #tpu.dot_dimension_numbers<[1], [0], [0], [1], [0, 0, 1, 1], [], []>} : vector<64x32xf32>, vector<32x256xf32>, vector<64x256xf32> -> vector<64x256xf32>
    %26 = arith.addf %21, %25 : vector<64x256xf32>
    %c4 = arith.constant 4 : index
    %c0_31 = arith.constant 0 : index
    %27 = vector.load %arg13[%c4, %c0_31] : memref<72x32xf32, #tpu.memory_space<vmem>>, vector<64x32xf32>
    %c4_32 = arith.constant 4 : index
    %c0_33 = arith.constant 0 : index
    %c0_34 = arith.constant 0 : index
    %28 = vector.load %arg2[%c4_32, %c0_33, %c0_34] : memref<5x32x256xf32, #tpu.memory_space<vmem>>, vector<1x32x256xf32>
    %29 = vector.shape_cast %28 : vector<1x32x256xf32> to vector<32x256xf32>
    %cst_35 = arith.constant dense<0.000000e+00> : vector<64x256xf32>
    %30 = tpu.matmul %27, %29, %cst_35 {dimension_numbers = #tpu.dot_dimension_numbers<[1], [0], [0], [1], [0, 0, 1, 1], [], []>} : vector<64x32xf32>, vector<32x256xf32>, vector<64x256xf32> -> vector<64x256xf32>
    %31 = arith.addf %26, %30 : vector<64x256xf32>
    %c0_36 = arith.constant 0 : index
    %c0_37 = arith.constant 0 : index
    %32 = vector.load %arg3[%c0_36, %c0_37] : memref<1x256xf32, #tpu.memory_space<vmem>>, vector<1x256xf32>
    %33 = vector.broadcast %32 : vector<1x256xf32> to vector<64x256xf32>
    %34 = arith.addf %31, %33 : vector<64x256xf32>
    %cst_38 = arith.constant 0.000000e+00 : f32
    %35 = vector.broadcast %cst_38 : f32 to vector<64x256xf32>
    %36 = arith.maximumf %34, %35 : vector<64x256xf32>
    %37 = vector.extract_strided_slice %36 {offsets = [0, 0], sizes = [64, 128], strides = [1, 1]} : vector<64x256xf32> to vector<64x128xf32>
    %38 = vector.extract_strided_slice %36 {offsets = [0, 128], sizes = [64, 128], strides = [1, 1]} : vector<64x256xf32> to vector<64x128xf32>
    %39 = arith.maximumf %37, %38 : vector<64x128xf32>
    %c0_39 = arith.constant 0 : index
    %c0_40 = arith.constant 0 : index
    %40 = vector.load %arg14[%c0_39, %c0_40] : memref<72x128xf32, #tpu.memory_space<vmem>>, vector<64x128xf32>
    tpu.vector_store %arg14[%c0_39, %c0_40], %39 {strides = array<i32>} : memref<72x128xf32, #tpu.memory_space<vmem>>, vector<64x128xf32>,
    %c1_41 = arith.constant 1 : index
    %c0_42 = arith.constant 0 : index
    %41 = vector.load %arg14[%c1_41, %c0_42] : memref<72x128xf32, #tpu.memory_space<vmem>>, vector<64x128xf32>
    %42 = arith.maximumf %39, %41 : vector<64x128xf32>
    %c0_43 = arith.constant 0 : index
    %c0_44 = arith.constant 0 : index
    %43 = vector.load %arg14[%c0_43, %c0_44] : memref<72x128xf32, #tpu.memory_space<vmem>>, vector<64x128xf32>
    tpu.vector_store %arg14[%c0_43, %c0_44], %42 {strides = array<i32>} : memref<72x128xf32, #tpu.memory_space<vmem>>, vector<64x128xf32>,
    %c0_45 = arith.constant 0 : index
    %c0_46 = arith.constant 0 : index
    %44 = vector.load %arg14[%c0_45, %c0_46] : memref<72x128xf32, #tpu.memory_space<vmem>>, vector<64x128xf32>
    %c0_47 = arith.constant 0 : index
    %c0_48 = arith.constant 0 : index
    %c0_49 = arith.constant 0 : index
    %45 = vector.load %arg4[%c0_47, %c0_48, %c0_49] : memref<5x128x256xf32, #tpu.memory_space<vmem>>, vector<1x128x256xf32>
    %46 = vector.shape_cast %45 : vector<1x128x256xf32> to vector<128x256xf32>
    %cst_50 = arith.constant dense<0.000000e+00> : vector<64x256xf32>
    %47 = tpu.matmul %44, %46, %cst_50 {dimension_numbers = #tpu.dot_dimension_numbers<[1], [0], [0], [1], [0, 0, 1, 1], [], []>} : vector<64x128xf32>, vector<128x256xf32>, vector<64x256xf32> -> vector<64x256xf32>
    %c2_51 = arith.constant 2 : index
    %c0_52 = arith.constant 0 : index
    %48 = vector.load %arg14[%c2_51, %c0_52] : memref<72x128xf32, #tpu.memory_space<vmem>>, vector<64x128xf32>
    %c1_53 = arith.constant 1 : index
    %c0_54 = arith.constant 0 : index
    %c0_55 = arith.constant 0 : index
    %49 = vector.load %arg4[%c1_53, %c0_54, %c0_55] : memref<5x128x256xf32, #tpu.memory_space<vmem>>, vector<1x128x256xf32>
    %50 = vector.shape_cast %49 : vector<1x128x256xf32> to vector<128x256xf32>
    %cst_56 = arith.constant dense<0.000000e+00> : vector<64x256xf32>
    %51 = tpu.matmul %48, %50, %cst_56 {dimension_numbers = #tpu.dot_dimension_numbers<[1], [0], [0], [1], [0, 0, 1, 1], [], []>} : vector<64x128xf32>, vector<128x256xf32>, vector<64x256xf32> -> vector<64x256xf32>
    %52 = arith.addf %47, %51 : vector<64x256xf32>
    %c4_57 = arith.constant 4 : index
    %c0_58 = arith.constant 0 : index
    %53 = vector.load %arg14[%c4_57, %c0_58] : memref<72x128xf32, #tpu.memory_space<vmem>>, vector<64x128xf32>
    %c2_59 = arith.constant 2 : index
    %c0_60 = arith.constant 0 : index
    %c0_61 = arith.constant 0 : index
    %54 = vector.load %arg4[%c2_59, %c0_60, %c0_61] : memref<5x128x256xf32, #tpu.memory_space<vmem>>, vector<1x128x256xf32>
    %55 = vector.shape_cast %54 : vector<1x128x256xf32> to vector<128x256xf32>
    %cst_62 = arith.constant dense<0.000000e+00> : vector<64x256xf32>
    %56 = tpu.matmul %53, %55, %cst_62 {dimension_numbers = #tpu.dot_dimension_numbers<[1], [0], [0], [1], [0, 0, 1, 1], [], []>} : vector<64x128xf32>, vector<128x256xf32>, vector<64x256xf32> -> vector<64x256xf32>
    %57 = arith.addf %52, %56 : vector<64x256xf32>
    %c6 = arith.constant 6 : index
    %c0_63 = arith.constant 0 : index
    %58 = vector.load %arg14[%c6, %c0_63] : memref<72x128xf32, #tpu.memory_space<vmem>>, vector<64x128xf32>
    %c3_64 = arith.constant 3 : index
    %c0_65 = arith.constant 0 : index
    %c0_66 = arith.constant 0 : index
    %59 = vector.load %arg4[%c3_64, %c0_65, %c0_66] : memref<5x128x256xf32, #tpu.memory_space<vmem>>, vector<1x128x256xf32>
    %60 = vector.shape_cast %59 : vector<1x128x256xf32> to vector<128x256xf32>
    %cst_67 = arith.constant dense<0.000000e+00> : vector<64x256xf32>
    %61 = tpu.matmul %58, %60, %cst_67 {dimension_numbers = #tpu.dot_dimension_numbers<[1], [0], [0], [1], [0, 0, 1, 1], [], []>} : vector<64x128xf32>, vector<128x256xf32>, vector<64x256xf32> -> vector<64x256xf32>
    %62 = arith.addf %57, %61 : vector<64x256xf32>
    %c8 = arith.constant 8 : index
    %c0_68 = arith.constant 0 : index
    %63 = vector.load %arg14[%c8, %c0_68] : memref<72x128xf32, #tpu.memory_space<vmem>>, vector<64x128xf32>
    %c4_69 = arith.constant 4 : index
    %c0_70 = arith.constant 0 : index
    %c0_71 = arith.constant 0 : index
    %64 = vector.load %arg4[%c4_69, %c0_70, %c0_71] : memref<5x128x256xf32, #tpu.memory_space<vmem>>, vector<1x128x256xf32>
    %65 = vector.shape_cast %64 : vector<1x128x256xf32> to vector<128x256xf32>
    %cst_72 = arith.constant dense<0.000000e+00> : vector<64x256xf32>
    %66 = tpu.matmul %63, %65, %cst_72 {dimension_numbers = #tpu.dot_dimension_numbers<[1], [0], [0], [1], [0, 0, 1, 1], [], []>} : vector<64x128xf32>, vector<128x256xf32>, vector<64x256xf32> -> vector<64x256xf32>
    %67 = arith.addf %62, %66 : vector<64x256xf32>
    %c0_73 = arith.constant 0 : index
    %c0_74 = arith.constant 0 : index
    %68 = vector.load %arg5[%c0_73, %c0_74] : memref<1x256xf32, #tpu.memory_space<vmem>>, vector<1x256xf32>
    %69 = vector.broadcast %68 : vector<1x256xf32> to vector<64x256xf32>
    %70 = arith.addf %67, %69 : vector<64x256xf32>
    %cst_75 = arith.constant 0.000000e+00 : f32
    %71 = vector.broadcast %cst_75 : f32 to vector<64x256xf32>
    %72 = arith.maximumf %70, %71 : vector<64x256xf32>
    %73 = vector.extract_strided_slice %72 {offsets = [0, 0], sizes = [64, 128], strides = [1, 1]} : vector<64x256xf32> to vector<64x128xf32>
    %74 = vector.extract_strided_slice %72 {offsets = [0, 128], sizes = [64, 128], strides = [1, 1]} : vector<64x256xf32> to vector<64x128xf32>
    %75 = arith.maximumf %73, %74 : vector<64x128xf32>
    %c0_76 = arith.constant 0 : index
    %c0_77 = arith.constant 0 : index
    %76 = vector.load %arg15[%c0_76, %c0_77] : memref<72x128xf32, #tpu.memory_space<vmem>>, vector<64x128xf32>
    tpu.vector_store %arg15[%c0_76, %c0_77], %75 {strides = array<i32>} : memref<72x128xf32, #tpu.memory_space<vmem>>, vector<64x128xf32>,
    %c2_78 = arith.constant 2 : index
    %c0_79 = arith.constant 0 : index
    %77 = vector.load %arg15[%c2_78, %c0_79] : memref<72x128xf32, #tpu.memory_space<vmem>>, vector<64x128xf32>
    %78 = arith.maximumf %75, %77 : vector<64x128xf32>
    %79 = tpu.iota {dimensions = array<i32: 0>} : vector<2x64xi32>
    %80 = tpu.iota {dimensions = array<i32: 1>} : vector<2x64xi32>
    %c32_i32 = arith.constant 32 : i32
    %81 = vector.broadcast %c32_i32 : i32 to vector<2x64xi32>
    %82 = arith.muli %79, %81 : vector<2x64xi32>
    %c0_i32 = arith.constant 0 : i32
    %83 = vector.broadcast %c0_i32 : i32 to vector<2x64xi32>
    %84 = arith.addi %82, %83 : vector<2x64xi32>
    %85 = arith.cmpi eq, %80, %84 : vector<2x64xi32>
    %86 = arith.extui %85 : vector<2x64xi1> to vector<2x64xi32>
    %87 = arith.sitofp %86 : vector<2x64xi32> to vector<2x64xf32>
    %cst_80 = arith.constant dense<0.000000e+00> : vector<2x128xf32>
    %88 = tpu.matmul %87, %78, %cst_80 {dimension_numbers = #tpu.dot_dimension_numbers<[1], [0], [0], [1], [0, 0, 1, 1], [], []>} : vector<2x64xf32>, vector<64x128xf32>, vector<2x128xf32> -> vector<2x128xf32>
    %c0_81 = arith.constant 0 : index
    %c0_82 = arith.constant 0 : index
    %c0_83 = arith.constant 0 : index
    %89 = vector.load %arg6[%c0_81, %c0_82, %c0_83] : memref<5x128x128xf32, #tpu.memory_space<vmem>>, vector<1x128x128xf32>
    %90 = vector.shape_cast %89 : vector<1x128x128xf32> to vector<128x128xf32>
    %cst_84 = arith.constant dense<0.000000e+00> : vector<2x128xf32>
    %91 = tpu.matmul %88, %90, %cst_84 {dimension_numbers = #tpu.dot_dimension_numbers<[1], [0], [0], [1], [0, 0, 1, 1], [], []>} : vector<2x128xf32>, vector<128x128xf32>, vector<2x128xf32> -> vector<2x128xf32>
    %c32_i32_85 = arith.constant 32 : i32
    %92 = vector.broadcast %c32_i32_85 : i32 to vector<2x64xi32>
    %93 = arith.muli %79, %92 : vector<2x64xi32>
    %c4_i32 = arith.constant 4 : i32
    %94 = vector.broadcast %c4_i32 : i32 to vector<2x64xi32>
    %95 = arith.addi %93, %94 : vector<2x64xi32>
    %96 = arith.cmpi eq, %80, %95 : vector<2x64xi32>
    %97 = arith.extui %96 : vector<2x64xi1> to vector<2x64xi32>
    %98 = arith.sitofp %97 : vector<2x64xi32> to vector<2x64xf32>
    %cst_86 = arith.constant dense<0.000000e+00> : vector<2x128xf32>
    %99 = tpu.matmul %98, %78, %cst_86 {dimension_numbers = #tpu.dot_dimension_numbers<[1], [0], [0], [1], [0, 0, 1, 1], [], []>} : vector<2x64xf32>, vector<64x128xf32>, vector<2x128xf32> -> vector<2x128xf32>
    %c1_87 = arith.constant 1 : index
    %c0_88 = arith.constant 0 : index
    %c0_89 = arith.constant 0 : index
    %100 = vector.load %arg6[%c1_87, %c0_88, %c0_89] : memref<5x128x128xf32, #tpu.memory_space<vmem>>, vector<1x128x128xf32>
    %101 = vector.shape_cast %100 : vector<1x128x128xf32> to vector<128x128xf32>
    %cst_90 = arith.constant dense<0.000000e+00> : vector<2x128xf32>
    %102 = tpu.matmul %99, %101, %cst_90 {dimension_numbers = #tpu.dot_dimension_numbers<[1], [0], [0], [1], [0, 0, 1, 1], [], []>} : vector<2x128xf32>, vector<128x128xf32>, vector<2x128xf32> -> vector<2x128xf32>
    %103 = arith.addf %91, %102 : vector<2x128xf32>
    %c32_i32_91 = arith.constant 32 : i32
    %104 = vector.broadcast %c32_i32_91 : i32 to vector<2x64xi32>
    %105 = arith.muli %79, %104 : vector<2x64xi32>
    %c8_i32 = arith.constant 8 : i32
    %106 = vector.broadcast %c8_i32 : i32 to vector<2x64xi32>
    %107 = arith.addi %105, %106 : vector<2x64xi32>
    %108 = arith.cmpi eq, %80, %107 : vector<2x64xi32>
    %109 = arith.extui %108 : vector<2x64xi1> to vector<2x64xi32>
    %110 = arith.sitofp %109 : vector<2x64xi32> to vector<2x64xf32>
    %cst_92 = arith.constant dense<0.000000e+00> : vector<2x128xf32>
    %111 = tpu.matmul %110, %78, %cst_92 {dimension_numbers = #tpu.dot_dimension_numbers<[1], [0], [0], [1], [0, 0, 1, 1], [], []>} : vector<2x64xf32>, vector<64x128xf32>, vector<2x128xf32> -> vector<2x128xf32>
    %c2_93 = arith.constant 2 : index
    %c0_94 = arith.constant 0 : index
    %c0_95 = arith.constant 0 : index
    %112 = vector.load %arg6[%c2_93, %c0_94, %c0_95] : memref<5x128x128xf32, #tpu.memory_space<vmem>>, vector<1x128x128xf32>
    %113 = vector.shape_cast %112 : vector<1x128x128xf32> to vector<128x128xf32>
    %cst_96 = arith.constant dense<0.000000e+00> : vector<2x128xf32>
    %114 = tpu.matmul %111, %113, %cst_96 {dimension_numbers = #tpu.dot_dimension_numbers<[1], [0], [0], [1], [0, 0, 1, 1], [], []>} : vector<2x128xf32>, vector<128x128xf32>, vector<2x128xf32> -> vector<2x128xf32>
    %115 = arith.addf %103, %114 : vector<2x128xf32>
    %c32_i32_97 = arith.constant 32 : i32
    %116 = vector.broadcast %c32_i32_97 : i32 to vector<2x64xi32>
    %117 = arith.muli %79, %116 : vector<2x64xi32>
    %c12_i32 = arith.constant 12 : i32
    %118 = vector.broadcast %c12_i32 : i32 to vector<2x64xi32>
    %119 = arith.addi %117, %118 : vector<2x64xi32>
    %120 = arith.cmpi eq, %80, %119 : vector<2x64xi32>
    %121 = arith.extui %120 : vector<2x64xi1> to vector<2x64xi32>
    %122 = arith.sitofp %121 : vector<2x64xi32> to vector<2x64xf32>
    %cst_98 = arith.constant dense<0.000000e+00> : vector<2x128xf32>
    %123 = tpu.matmul %122, %78, %cst_98 {dimension_numbers = #tpu.dot_dimension_numbers<[1], [0], [0], [1], [0, 0, 1, 1], [], []>} : vector<2x64xf32>, vector<64x128xf32>, vector<2x128xf32> -> vector<2x128xf32>
    %c3_99 = arith.constant 3 : index
    %c0_100 = arith.constant 0 : index
    %c0_101 = arith.constant 0 : index
    %124 = vector.load %arg6[%c3_99, %c0_100, %c0_101] : memref<5x128x128xf32, #tpu.memory_space<vmem>>, vector<1x128x128xf32>
    %125 = vector.shape_cast %124 : vector<1x128x128xf32> to vector<128x128xf32>
    %cst_102 = arith.constant dense<0.000000e+00> : vector<2x128xf32>
    %126 = tpu.matmul %123, %125, %cst_102 {dimension_numbers = #tpu.dot_dimension_numbers<[1], [0], [0], [1], [0, 0, 1, 1], [], []>} : vector<2x128xf32>, vector<128x128xf32>, vector<2x128xf32> -> vector<2x128xf32>
    %127 = arith.addf %115, %126 : vector<2x128xf32>
    %c32_i32_103 = arith.constant 32 : i32
    %128 = vector.broadcast %c32_i32_103 : i32 to vector<2x64xi32>
    %129 = arith.muli %79, %128 : vector<2x64xi32>
    %c16_i32 = arith.constant 16 : i32
    %130 = vector.broadcast %c16_i32 : i32 to vector<2x64xi32>
    %131 = arith.addi %129, %130 : vector<2x64xi32>
    %132 = arith.cmpi eq, %80, %131 : vector<2x64xi32>
    %133 = arith.extui %132 : vector<2x64xi1> to vector<2x64xi32>
    %134 = arith.sitofp %133 : vector<2x64xi32> to vector<2x64xf32>
    %cst_104 = arith.constant dense<0.000000e+00> : vector<2x128xf32>
    %135 = tpu.matmul %134, %78, %cst_104 {dimension_numbers = #tpu.dot_dimension_numbers<[1], [0], [0], [1], [0, 0, 1, 1], [], []>} : vector<2x64xf32>, vector<64x128xf32>, vector<2x128xf32> -> vector<2x128xf32>
    %c4_105 = arith.constant 4 : index
    %c0_106 = arith.constant 0 : index
    %c0_107 = arith.constant 0 : index
    %136 = vector.load %arg6[%c4_105, %c0_106, %c0_107] : memref<5x128x128xf32, #tpu.memory_space<vmem>>, vector<1x128x128xf32>
    %137 = vector.shape_cast %136 : vector<1x128x128xf32> to vector<128x128xf32>
    %cst_108 = arith.constant dense<0.000000e+00> : vector<2x128xf32>
    %138 = tpu.matmul %135, %137, %cst_108 {dimension_numbers = #tpu.dot_dimension_numbers<[1], [0], [0], [1], [0, 0, 1, 1], [], []>} : vector<2x128xf32>, vector<128x128xf32>, vector<2x128xf32> -> vector<2x128xf32>
    %139 = arith.addf %127, %138 : vector<2x128xf32>
    %c0_109 = arith.constant 0 : index
    %c0_110 = arith.constant 0 : index
    %140 = vector.load %arg7[%c0_109, %c0_110] : memref<1x128xf32, #tpu.memory_space<vmem>>, vector<1x128xf32>
    %141 = vector.broadcast %140 : vector<1x128xf32> to vector<2x128xf32>
    %142 = arith.addf %139, %141 : vector<2x128xf32>
    %cst_111 = arith.constant 0.000000e+00 : f32
    %143 = vector.broadcast %cst_111 : f32 to vector<2x128xf32>
    %144 = arith.maximumf %142, %143 : vector<2x128xf32>
    %c0_112 = arith.constant 0 : index
    %c0_113 = arith.constant 0 : index
    %145 = vector.load %arg8[%c0_112, %c0_113] : memref<128x128xf32, #tpu.memory_space<vmem>>, vector<128x128xf32>
    %cst_114 = arith.constant dense<0.000000e+00> : vector<2x128xf32>
    %146 = tpu.matmul %144, %145, %cst_114 {dimension_numbers = #tpu.dot_dimension_numbers<[1], [0], [0], [1], [0, 0, 1, 1], [], []>} : vector<2x128xf32>, vector<128x128xf32>, vector<2x128xf32> -> vector<2x128xf32>
    %c0_115 = arith.constant 0 : index
    %c0_116 = arith.constant 0 : index
    %147 = vector.load %arg9[%c0_115, %c0_116] : memref<1x128xf32, #tpu.memory_space<vmem>>, vector<1x128xf32>
    %148 = vector.broadcast %147 : vector<1x128xf32> to vector<2x128xf32>
    %149 = arith.addf %146, %148 : vector<2x128xf32>
    %cst_117 = arith.constant 0.000000e+00 : f32
    %150 = vector.broadcast %cst_117 : f32 to vector<2x128xf32>
    %151 = arith.maximumf %149, %150 : vector<2x128xf32>
    %c0_118 = arith.constant 0 : index
    %c0_119 = arith.constant 0 : index
    %152 = vector.load %arg10[%c0_118, %c0_119] : memref<128x128xf32, #tpu.memory_space<vmem>>, vector<128x128xf32>
    %cst_120 = arith.constant dense<0.000000e+00> : vector<2x128xf32>
    %153 = tpu.matmul %151, %152, %cst_120 {dimension_numbers = #tpu.dot_dimension_numbers<[1], [0], [0], [1], [0, 0, 1, 1], [], []>} : vector<2x128xf32>, vector<128x128xf32>, vector<2x128xf32> -> vector<2x128xf32>
    %c0_121 = arith.constant 0 : index
    %c0_122 = arith.constant 0 : index
    %154 = vector.load %arg11[%c0_121, %c0_122] : memref<1x128xf32, #tpu.memory_space<vmem>>, vector<1x128xf32>
    %155 = vector.broadcast %154 : vector<1x128xf32> to vector<2x128xf32>
    %156 = arith.addf %153, %155 : vector<2x128xf32>
    %c0_123 = arith.constant 0 : index
    %c0_124 = arith.constant 0 : index
    %157 = vector.load %arg12[%c0_123, %c0_124] : memref<2x128xf32, #tpu.memory_space<vmem>>, vector<2x128xf32>
    tpu.vector_store %arg12[%c0_123, %c0_124], %156 {strides = array<i32>} : memref<2x128xf32, #tpu.memory_space<vmem>>, vector<2x128xf32>,
    return
  }
  func.func @transform_0(%arg0: i32) -> (i32, i32) {
    %c0_i32 = arith.constant 0 : i32
    %c0_i32_0 = arith.constant 0 : i32
    return %arg0, %c0_i32 : i32, i32
  }
  func.func @transform_1(%arg0: i32) -> (i32, i32, i32) {
    %c0_i32 = arith.constant 0 : i32
    %c0_i32_0 = arith.constant 0 : i32
    %c0_i32_1 = arith.constant 0 : i32
    %c0_i32_2 = arith.constant 0 : i32
    return %c0_i32, %c0_i32_0, %c0_i32_1 : i32, i32, i32
  }
  func.func @transform_2(%arg0: i32) -> (i32, i32) {
    %c0_i32 = arith.constant 0 : i32
    %c0_i32_0 = arith.constant 0 : i32
    %c0_i32_1 = arith.constant 0 : i32
    return %c0_i32, %c0_i32_0 : i32, i32
  }
  func.func @transform_3(%arg0: i32) -> (i32, i32, i32) {
    %c0_i32 = arith.constant 0 : i32
    %c0_i32_0 = arith.constant 0 : i32
    %c0_i32_1 = arith.constant 0 : i32
    %c0_i32_2 = arith.constant 0 : i32
    return %c0_i32, %c0_i32_0, %c0_i32_1 : i32, i32, i32
  }
  func.func @transform_4(%arg0: i32) -> (i32, i32) {
    %c0_i32 = arith.constant 0 : i32
    %c0_i32_0 = arith.constant 0 : i32
    %c0_i32_1 = arith.constant 0 : i32
    return %c0_i32, %c0_i32_0 : i32, i32
  }
  func.func @transform_5(%arg0: i32) -> (i32, i32, i32) {
    %c0_i32 = arith.constant 0 : i32
    %c0_i32_0 = arith.constant 0 : i32
    %c0_i32_1 = arith.constant 0 : i32
    %c0_i32_2 = arith.constant 0 : i32
    return %c0_i32, %c0_i32_0, %c0_i32_1 : i32, i32, i32
  }
  func.func @transform_6(%arg0: i32) -> (i32, i32) {
    %c0_i32 = arith.constant 0 : i32
    %c0_i32_0 = arith.constant 0 : i32
    %c0_i32_1 = arith.constant 0 : i32
    return %c0_i32, %c0_i32_0 : i32, i32
  }
  func.func @transform_7(%arg0: i32) -> (i32, i32) {
    %c0_i32 = arith.constant 0 : i32
    %c0_i32_0 = arith.constant 0 : i32
    %c0_i32_1 = arith.constant 0 : i32
    return %c0_i32, %c0_i32_0 : i32, i32
  }
  func.func @transform_8(%arg0: i32) -> (i32, i32) {
    %c0_i32 = arith.constant 0 : i32
    %c0_i32_0 = arith.constant 0 : i32
    %c0_i32_1 = arith.constant 0 : i32
    return %c0_i32, %c0_i32_0 : i32, i32
  }
  func.func @transform_9(%arg0: i32) -> (i32, i32) {
    %c0_i32 = arith.constant 0 : i32
    %c0_i32_0 = arith.constant 0 : i32
    %c0_i32_1 = arith.constant 0 : i32
    return %c0_i32, %c0_i32_0 : i32, i32
  }
  func.func @transform_10(%arg0: i32) -> (i32, i32) {
    %c0_i32 = arith.constant 0 : i32
    %c0_i32_0 = arith.constant 0 : i32
    %c0_i32_1 = arith.constant 0 : i32
    return %c0_i32, %c0_i32_0 : i32, i32
  }
  func.func @transform_11(%arg0: i32) -> (i32, i32) {
    %c0_i32 = arith.constant 0 : i32
    %c0_i32_0 = arith.constant 0 : i32
    return %arg0, %c0_i32 : i32, i32
  }
}

</mosaic_0001>

<bundles_post_ra>
// kernel: net_forward.1
= control target key start
LH: loop header
LB: loop body
LE: loop exit
PB: predicated region body
PF: predicated region fallthrough
CT: control target
= control target key end

     0   :  { %16 = vsyncpa [#allocation6], 0  ;;  %s4847_s0 = inlined_call_operand.hbm [shape: f32[64,32], index: 0, kind: input, shape index: {}]   ;;  %s4848_s1 = inlined_call_operand.hbm [shape: f32[5,32,256], index: 1, kind: input, shape index: {}]   ;;  %s4849_s2 = inlined_call_operand.vmem [shape: f32[1,256], index: 2, kind: input, shape index: {}]   ;;  %s4850_s3 = inlined_call_operand.hbm [shape: f32[5,128,256], index: 3, kind: input, shape index: {}]   ;;  %s4851_s4 = inlined_call_operand.vmem [shape: f32[1,256], index: 4, kind: input, shape index: {}]   ;;  %s4852_s5 = inlined_call_operand.hbm [shape: f32[5,128,128], index: 5, kind: input, shape index: {}]   ;;  %s4853_s6 = inlined_call_operand.vmem [shape: f32[1,128], index: 6, kind: input, shape index: {}]   ;;  %s4854_s7 = inlined_call_operand.hbm [shape: f32[128,128], index: 7, kind: input, shape index: {}]   ;;  %s4855_s8 = inlined_call_operand.vmem [shape: f32[1,128], index: 8, kind: input, shape index: {}]   ;;  %s4856_s9 = inlined_call_operand.hbm [shape: f32[128,128], index: 9, kind: input, shape index: {}]   ;;  %s4857_s10 = inlined_call_operand.vmem [shape: f32[1,128], index: 10, kind: input, shape index: {}]   ;;  %s4858_s11 = inlined_call_operand.hbm [shape: f32[2,128], index: 11, kind: output, shape index: {}]  }
   0x1   :  { %17 = vsyncpa [#allocation9], 0 }
   0x2   :  { %18 = vsyncpa [#allocation12], 0 }
   0x3   :  { %19 = vsyncpa [#allocation15], 0 }
   0x4   :  { %20 = vsyncpa [#allocation7], 0  ;;  %s4270_s17 = smov [#allocation8]   ;;  %s4106_s21 = scalar_lea.hbm %s4848_s1, 5120 }
   0x5   :  { %s38_s18 = sshll.u32 %s4270_s17, 4  ;;  %p4107_p0 = scmp.ne.s32.totalorder %s4848_s1, %s4106_s21  ;;  %s39_s18 = int_to_ptr.vmem [resolvable:$true] %s38_s18 }
   0x6   :  { %p4110_p1 = scmp.lt.u32.totalorder %s4106_s21, %s4848_s1 }
   0x8   :  { %p4112_p2 = pnand %p4110_p1, %p4107_p0 }
   0xa   :  { %4115 = shalt.err (!%p4112_p2)
}
   0xb   :  { %s4116_s26 = scalar_lea.vmem %s39_s18, 5120  ;;  %p4121_p4 = scmp.lt.s32.totalorder %s39_s18, %s39_s18 }
   0xc   :  { %p4117_p3 = scmp.ne.s32.totalorder %s39_s18, %s4116_s26  ;;  %p4122_p5 = scmp.lt.s32.totalorder %s4116_s26, %s4116_s26 }
   0xe   :  { %p4123_p6 = por %p4122_p5, %p4121_p4 }
  0x10   :  { %p4124_p7 = pnand %p4123_p6, %p4117_p3 }
  0x12   :  { %4127 = shalt.err (!%p4124_p7)
}
  0x13   :  { %s4271_s27 = smov 256   ;;  %s4272_s28 = smov 16  }
  0x14   :  { %44 = dma.hbm_to_vmem [thread:$0]  %s4848_s1, 5120, %s39_s18, [#allocation9], %s4271_s27, %s4271_s27, %s4272_s28  }
  0x15   :  { %s4273_s12 = smov [#allocation11]   ;;  %s4274_s14 = smov [#allocation5]  }
  0x16   :  { %s66_s13 = sshll.u32 %s4273_s12, 4  ;;  %s26_s15 = sshll.u32 %s4274_s14, 4  ;;  %s67_s13 = int_to_ptr.vmem [resolvable:$true] %s66_s13  ;;  %s27_s15 = int_to_ptr.vmem [resolvable:$true] %s26_s15 }
  0x17   :  { %s4128_s19 = scalar_lea.hbm %s4852_s5, 10240 }
  0x18   :  { %p4129_p8 = scmp.ne.s32.totalorder %s4852_s5, %s4128_s19  ;;  %p4132_p9 = scmp.lt.u32.totalorder %s4128_s19, %s4852_s5 }
  0x1a   :  { %p4134_p10 = pnand %p4132_p9, %p4129_p8 }
  0x1c   :  { %4137 = shalt.err (!%p4134_p10)
}
  0x1d   :  { %s4138_s1 = scalar_lea.vmem %s67_s13, 10240  ;;  %p4143_p12 = scmp.lt.s32.totalorder %s67_s13, %s67_s13 }
  0x1e   :  { %p4139_p11 = scmp.ne.s32.totalorder %s67_s13, %s4138_s1  ;;  %p4144_p13 = scmp.lt.s32.totalorder %s4138_s1, %s4138_s1 }
  0x20   :  { %p4145_p0 = por %p4144_p13, %p4143_p12 }
  0x22   :  { %p4146_p1 = pnand %p4145_p0, %p4139_p11 }
  0x24   :  { %4149 = shalt.err (!%p4146_p1)
}
  0x25   :  { %s4275_s18 = smov 128   ;;  %s4276_s24 = smov 8  }
  0x26   :  { %72 = dma.hbm_to_vmem [thread:$0]  %s4852_s5, 10240, %s67_s13, [#allocation12], %s4275_s18, %s4275_s18, %s4276_s24  }
  0x27   :  { %s4150_s12 = scalar_lea.hbm %s4847_s0, 1024 }
  0x28   :  { %p4151_p2 = scmp.ne.s32.totalorder %s4847_s0, %s4150_s12  ;;  %p4154_p3 = scmp.lt.u32.totalorder %s4150_s12, %s4847_s0 }
  0x2a   :  { %p4156_p4 = pnand %p4154_p3, %p4151_p2 }
  0x2c   :  { %4159 = shalt.err (!%p4156_p4)
}
  0x2d   :  { %s4160_s20 = scalar_lea.vmem %s27_s15, 1024  ;;  %p4165_p6 = scmp.lt.s32.totalorder %s27_s15, %s27_s15 }
  0x2e   :  { %p4161_p5 = scmp.ne.s32.totalorder %s27_s15, %s4160_s20  ;;  %p4166_p7 = scmp.lt.s32.totalorder %s4160_s20, %s4160_s20 }
  0x30   :  { %p4167_p8 = por %p4166_p7, %p4165_p6 }
  0x32   :  { %p4168_p9 = pnand %p4167_p8, %p4161_p5 }
  0x34   :  { %4171 = shalt.err (!%p4168_p9)
}
  0x35   :  { %32 = dma.hbm_to_vmem [thread:$0]  %s4847_s0, 1024, %s27_s15, [#allocation6], %s4275_s18, %s4275_s18, %s4276_s24  }
  0x36   :  { %s4277_s21 = smov [#allocation10]   ;;  %s4278_s23 = smov [#allocation13]  }
  0x37   :  { %s52_s22 = sshll.u32 %s4277_s21, 4  ;;  %s80_s1 = sshll.u32 %s4278_s23, 4  ;;  %s53_s22 = int_to_ptr.vmem [resolvable:$true] %s52_s22  ;;  %s81_s1 = int_to_ptr.vmem [resolvable:$true] %s80_s1 }
  0x38   :  { %s4172_s29 = scalar_lea.hbm %s4850_s3, 20480 }
  0x39   :  { %p4173_p10 = scmp.ne.s32.totalorder %s4850_s3, %s4172_s29  ;;  %p4176_p11 = scmp.lt.u32.totalorder %s4172_s29, %s4850_s3 }
  0x3b   :  { %p4178_p12 = pnand %p4176_p11, %p4173_p10 }
  0x3d   :  { %4181 = shalt.err (!%p4178_p12)
}
  0x3e   :  { %s4182_s0 = scalar_lea.vmem %s53_s22, 20480  ;;  %p4187_p0 = scmp.lt.s32.totalorder %s53_s22, %s53_s22 }
  0x3f   :  { %p4183_p13 = scmp.ne.s32.totalorder %s53_s22, %s4182_s0  ;;  %p4188_p1 = scmp.lt.s32.totalorder %s4182_s0, %s4182_s0 }
  0x41   :  { %p4189_p2 = por %p4188_p1, %p4187_p0 }
  0x43   :  { %p4190_p3 = pnand %p4189_p2, %p4183_p13 }
  0x45   :  { %4193 = shalt.err (!%p4190_p3)
}
  0x46   :  { %58 = dma.hbm_to_vmem [thread:$0]  %s4850_s3, 20480, %s53_s22, [#allocation9], %s4271_s27, %s4271_s27, %s4272_s28  }
  0x47   :  { %s4194_s5 = scalar_lea.hbm %s4854_s7, 2048 }
  0x48   :  { %p4195_p4 = scmp.ne.s32.totalorder %s4854_s7, %s4194_s5  ;;  %p4198_p5 = scmp.lt.u32.totalorder %s4194_s5, %s4854_s7 }
  0x4a   :  { %p4200_p6 = pnand %p4198_p5, %p4195_p4 }
  0x4c   :  { %4203 = shalt.err (!%p4200_p6)
}
  0x4d   :  { %s4204_s26 = scalar_lea.vmem %s81_s1, 2048  ;;  %p4209_p8 = scmp.lt.s32.totalorder %s81_s1, %s81_s1 }
  0x4e   :  { %p4205_p7 = scmp.ne.s32.totalorder %s81_s1, %s4204_s26  ;;  %p4210_p9 = scmp.lt.s32.totalorder %s4204_s26, %s4204_s26 }
  0x50   :  { %p4211_p10 = por %p4210_p9, %p4209_p8 }
  0x52   :  { %p4212_p11 = pnand %p4211_p10, %p4205_p7 }
  0x54   :  { %4215 = shalt.err (!%p4212_p11)
}
  0x55   :  { %86 = dma.hbm_to_vmem [thread:$0]  %s4854_s7, 2048, %s81_s1, [#allocation12], %s4275_s18, %s4275_s18, %s4276_s24  }
  0x56   :  { %s4279_s28 = smov [#allocation14]   ;;  %s4216_s12 = scalar_lea.hbm %s4856_s9, 2048 }
  0x57   :  { %s94_s22 = sshll.u32 %s4279_s28, 4  ;;  %p4217_p12 = scmp.ne.s32.totalorder %s4856_s9, %s4216_s12  ;;  %s95_s22 = int_to_ptr.vmem [resolvable:$true] %s94_s22 }
  0x58   :  { %p4220_p13 = scmp.lt.u32.totalorder %s4216_s12, %s4856_s9 }
  0x5a   :  { %p4222_p0 = pnand %p4220_p13, %p4217_p12 }
  0x5c   :  { %4225 = shalt.err (!%p4222_p0)
}
  0x5d   :  { %s4226_s17 = scalar_lea.vmem %s95_s22, 2048  ;;  %p4231_p2 = scmp.lt.s32.totalorder %s95_s22, %s95_s22 }
  0x5e   :  { %p4227_p1 = scmp.ne.s32.totalorder %s95_s22, %s4226_s17  ;;  %p4232_p3 = scmp.lt.s32.totalorder %s4226_s17, %s4226_s17 }
  0x60   :  { %p4233_p4 = por %p4232_p3, %p4231_p2 }
  0x62   :  { %p4234_p5 = pnand %p4233_p4, %p4227_p1 }
  0x64   :  { %4237 = shalt.err (!%p4234_p5)
}
  0x65   :  { %100 = dma.hbm_to_vmem [thread:$0]  %s4856_s9, 2048, %s95_s22, [#allocation15], %s4275_s18, %s4275_s18, %s4276_s24  }
  0x66   :  { %4260 = dma.done.wait [#allocation6], 1024  }
  0x67   :  { %4261 = vsyncadd [#allocation6], 4294966272 }
  0x68   :  { %4262 = dma.done.wait [#allocation9], 25600  }
  0x69   :  { %4263 = vsyncadd [#allocation9], 4294941696 }
  0x6a   :  { %4264 = dma.done.wait [#allocation12], 12288  }
  0x6b   :  { %4265 = vsyncadd [#allocation12], 4294955008 }
  0x6c   :  { %4266 = dma.done.wait [#allocation15], 2048  }
  0x6d   :  { %4267 = vsyncadd [#allocation15], 4294965248  ;;  %vm121_vm0 = vcmask 261120   ;;  %v4280_v0 = vmov 0.0   ;;  %v167_v1 = vld [vmem:[#allocation8 + $0x48] sm:$0xff]  ;;  %v169_v2 = vld [vmem:[#allocation8 + $0x58] sm:$0xff] }
  0x6e   :  { %262 = vmatprep.mubr.f32.mxu0 %v4280_v0  ;;  %123 = vst [vmem:[#allocation3 + $0x40] sm:$0xff] %v4280_v0  ;;  %124 = vst [vmem:[#allocation4 + $0x40] sm:$0xff] %v4280_v0  ;;  %1187 = vmatprep.mubr.f32.mxu1 %v4280_v0  ;;  %v166_v3 = vld [vmem:[#allocation8 + $0x40] sm:$0xff]  ;;  %v3534_v4 = vpack.c.bf16 %v169_v2, %v167_v1  ;;  %v168_v5 = vld [vmem:[#allocation8 + $0x50] sm:$0xff]  ;;  %vm4282_vm1 = vmmov 0   ;;  %vm1943_vm3 = vcmask 523264  }
  0x6f   :  { %122 = vst.msk [vmem:[#allocation2 + $0x40] sm:$0xff] %vm121_vm0, %v4280_v0  ;;  %v171_v6 = vld [vmem:[#allocation8 + $0x68] sm:$0xff]  ;;  %v173_v7 = vld [vmem:[#allocation8 + $0x78] sm:$0xff]  ;;  %v3536_v8 = vpack.c.bf16 %v168_v5, %v166_v3  ;;  %v170_v10 = vld [vmem:[#allocation8 + $0x60] sm:$0xff]  ;;  %s4283_s21 = smov [#allocation16]  }
  0x70   :  { %v3538_v9 = vpack.c.bf16 %v173_v7, %v171_v6  ;;  %v172_v11 = vld [vmem:[#allocation8 + $0x70] sm:$0xff]  ;;  %v125_v12 = vld [vmem:[#allocation5] sm:$0xff]  ;;  %3535 = vmatprep.subr.bf16.mxu0 %v3534_v4  ;;  %v126_v13 = vld [vmem:[#allocation5 + $0x8] sm:$0xff]  ;;  %s2965_s23 = sshll.u32 %s4283_s21, 4  ;;  %s2966_s23 = int_to_ptr.vmem [resolvable:$true] %s2965_s23 }
  0x71   :  { %133 = vst.msk [vmem:[#allocation2] sm:$0xff] %vm121_vm0, %v125_v12  ;;  %v127_v14 = vld [vmem:[#allocation5 + $0x10] sm:$0xff]  ;;  %v128_v15 = vld [vmem:[#allocation5 + $0x18] sm:$0xff]  ;;  %3537 = vmatpush1.bf16.msra.mxu0 %v3536_v8  ;;  %v3540_v16 = vpack.c.bf16 %v172_v11, %v170_v10  ;;  %134 = vst.msk [vmem:[#allocation2 + $0x8] sm:$0xff] %vm121_vm0, %v126_v13  ;;  %s4238_s25 = scalar_lea.vmem %s2966_s23, 32  ;;  %p4243_p7 = scmp.lt.s32.totalorder %s2966_s23, %s2966_s23 }
  0x72   :  { %135 = vst.msk [vmem:[#allocation2 + $0x10] sm:$0xff] %vm121_vm0, %v127_v14  ;;  %136 = vst.msk [vmem:[#allocation2 + $0x18] sm:$0xff] %vm121_vm0, %v128_v15  ;;  %v150_v17 = vld [vmem:[#allocation8 + $0x8] sm:$0xff]  ;;  %v152_v18 = vld [vmem:[#allocation8 + $0x18] sm:$0xff]  ;;  %3539 = vmatprep.subr.bf16.mxu0 %v3538_v9  ;;  %p4239_p6 = scmp.ne.s32.totalorder %s2966_s23, %s4238_s25  ;;  %p4244_p8 = scmp.lt.s32.totalorder %s4238_s25, %s4238_s25 }
  0x73   :  { %v3542_v19 = vpack.c.bf16 %v152_v18, %v150_v17  ;;  %v149_v20 = vld [vmem:[#allocation8] sm:$0xff]  ;;  %v130_v22 = vld [vmem:[#allocation5 + $0x28] sm:$0xff]  ;;  %v151_v23 = vld [vmem:[#allocation8 + $0x10] sm:$0xff] }
  0x74   :  { %v129_v21 = vld [vmem:[#allocation5 + $0x20] sm:$0xff]  ;;  %138 = vst.msk [vmem:[#allocation2 + $0x28] sm:$0xff] %vm121_vm0, %v130_v22  ;;  %v131_v24 = vld [vmem:[#allocation5 + $0x30] sm:$0xff]  ;;  %v132_v25 = vld [vmem:[#allocation5 + $0x38] sm:$0xff]  ;;  %v3544_v28 = vpack.c.bf16 %v151_v23, %v149_v20  ;;  %p4245_p9 = por %p4244_p8, %p4243_p7 }
  0x75   :  { %137 = vst.msk [vmem:[#allocation2 + $0x20] sm:$0xff] %vm121_vm0, %v129_v21  ;;  %139 = vst.msk [vmem:[#allocation2 + $0x30] sm:$0xff] %vm121_vm0, %v131_v24  ;;  %v154_v26 = vld [vmem:[#allocation8 + $0x28] sm:$0xff]  ;;  %v156_v27 = vld [vmem:[#allocation8 + $0x38] sm:$0xff]  ;;  %3541 = vmatpush1.bf16.msra.mxu0 %v3540_v16 }
  0x76   :  { %140 = vst.msk [vmem:[#allocation2 + $0x38] sm:$0xff] %vm121_vm0, %v132_v25  ;;  %3543 = vmatprep.subr.bf16.mxu0 %v3542_v19  ;;  %v3546_v29 = vpack.c.bf16 %v156_v27, %v154_v26  ;;  %v153_v30 = vld [vmem:[#allocation8 + $0x20] sm:$0xff]  ;;  %v155_v31 = vld [vmem:[#allocation8 + $0x30] sm:$0xff]  ;;  %v458_v33 = vld [vmem:[#allocation8 + $0x88] sm:$0xff]  ;;  %p4246_p10 = pnand %p4245_p9, %p4239_p6 }
  0x77   :  { %v460_v34 = vld [vmem:[#allocation8 + $0x98] sm:$0xff]  ;;  %v3548_v36 = vpack.c.bf16 %v155_v31, %v153_v30  ;;  %v457_v44 = vld [vmem:[#allocation8 + $0x80] sm:$0xff]  ;;  %v459_v45 = vld [vmem:[#allocation8 + $0x90] sm:$0xff] }
  0x78   :  { %v157_v32 = vld [vmem:[#allocation2 + $0x1] sm:$0xff]  ;;  %v3550_v37 = vpack.c.bf16 %v460_v34, %v458_v33  ;;  %v464_v47 = vld [vmem:[#allocation8 + $0xb8] sm:$0xff]  ;;  %v3552_v49 = vpack.c.bf16 %v459_v45, %v457_v44  ;;  %v461_v51 = vld [vmem:[#allocation8 + $0xa0] sm:$0xff] }
  0x79   :  { %2977 = vmatmul.mubr.msk.f32.vlgmr.msra.gmra.mrb[0].mxu0 %vm121_vm0, %v157_v32  ;;  %v158_v35 = vld [vmem:[#allocation2 + $0x9] sm:$0xff]  ;;  %v159_v38 = vld [vmem:[#allocation2 + $0x11] sm:$0xff]  ;;  %v462_v46 = vld [vmem:[#allocation8 + $0xa8] sm:$0xff] }
  0x7a   :  { %268 = vmatprep.mubr.f32.mxu0 %v4280_v0  ;;  %3545 = vmatpush1.bf16.msra.mxu0 %v3544_v28  ;;  %v141_v48 = vld [vmem:[#allocation2] sm:$0xff]  ;;  %v3554_v50 = vpack.c.bf16 %v464_v47, %v462_v46  ;;  %v463_v52 = vld [vmem:[#allocation8 + $0xb0] sm:$0xff]  ;;  %v630_v54 = vld [vmem:[#allocation8 + $0xd8] sm:$0xff] }
  0x7b   :  { %3547 = vmatprep.subr.bf16.mxu0 %v3546_v29  ;;  %v628_v53 = vld [vmem:[#allocation8 + $0xc8] sm:$0xff]  ;;  %v142_v55 = vld [vmem:[#allocation2 + $0x8] sm:$0xff]  ;;  %v3556_v56 = vpack.c.bf16 %v463_v52, %v461_v51  ;;  %v143_v58 = vld [vmem:[#allocation2 + $0x10] sm:$0xff] }
  0x7c   :  { %v160_v39 = vld [vmem:[#allocation2 + $0x19] sm:$0xff]  ;;  %v161_v40 = vld [vmem:[#allocation2 + $0x21] sm:$0xff]  ;;  %v162_v41 = vld [vmem:[#allocation2 + $0x29] sm:$0xff]  ;;  %v3558_v57 = vpack.c.bf16 %v630_v54, %v628_v53 }
  0x7d   :  { %2978 = vmatmul.mubr.msk.f32.gmra.mrb[2].mxu0 %vm121_vm0, %v158_v35  ;;  %v163_v42 = vld [vmem:[#allocation2 + $0x31] sm:$0xff]  ;;  %v164_v43 = vld [vmem:[#allocation2 + $0x39] sm:$0xff]  ;;  %v146_v61 = vld [vmem:[#allocation2 + $0x28] sm:$0xff] }
  0x7e   :  { %274 = vmatprep.mubr.f32.mxu0 %v4280_v0  ;;  %3549 = vmatpush1.bf16.msra.mxu0 %v3548_v36  ;;  %v144_v59 = vld [vmem:[#allocation2 + $0x18] sm:$0xff]  ;;  %v145_v60 = vld [vmem:[#allocation2 + $0x20] sm:$0xff]  ;;  %v147_v62 = vld [vmem:[#allocation2 + $0x30] sm:$0xff] }
  0x7f   :  { %3551 = vmatprep.subr.bf16.mxu0 %v3550_v37  ;;  %v148_v63 = vld [vmem:[#allocation2 + $0x38] sm:$0xff]  ;;  %v629_v2 = vld [vmem:[#allocation8 + $0xd0] sm:$0xff]  ;;  %v632_v3 = vld [vmem:[#allocation8 + $0xe8] sm:$0xff] }
  0x80   :  { %v627_v1 = vld [vmem:[#allocation8 + $0xc0] sm:$0xff]  ;;  %v634_v4 = vld [vmem:[#allocation8 + $0xf8] sm:$0xff]  ;;  %v448_v5 = vld [vmem:[#allocation2 + $0x2] sm:$0xff] }
  0x81   :  { %2979 = vmatmul.mubr.msk.f32.gmra.mrb[4].mxu0 %vm121_vm0, %v159_v38  ;;  %v3560_v6 = vpack.c.bf16 %v629_v2, %v627_v1  ;;  %v3562_v7 = vpack.c.bf16 %v634_v4, %v632_v3  ;;  %v631_v8 = vld [vmem:[#allocation8 + $0xe0] sm:$0xff]  ;;  %v633_v9 = vld [vmem:[#allocation8 + $0xf0] sm:$0xff]  ;;  %v798_v10 = vld [vmem:[#allocation8 + $0x108] sm:$0xff] }
  0x82   :  { %280 = vmatprep.mubr.f32.mxu0 %v4280_v0  ;;  %v800_v11 = vld [vmem:[#allocation8 + $0x118] sm:$0xff]  ;;  %v3564_v13 = vpack.c.bf16 %v633_v9, %v631_v8  ;;  %v451_v16 = vld [vmem:[#allocation2 + $0x1a] sm:$0xff]  ;;  %v452_v17 = vld [vmem:[#allocation2 + $0x22] sm:$0xff] }
  0x83   :  { %v449_v12 = vld [vmem:[#allocation2 + $0xa] sm:$0xff]  ;;  %v3566_v14 = vpack.c.bf16 %v800_v11, %v798_v10  ;;  %v450_v15 = vld [vmem:[#allocation2 + $0x12] sm:$0xff]  ;;  %v455_v20 = vld [vmem:[#allocation2 + $0x3a] sm:$0xff] }
  0x84   :  { %v453_v18 = vld [vmem:[#allocation2 + $0x2a] sm:$0xff]  ;;  %v454_v19 = vld [vmem:[#allocation2 + $0x32] sm:$0xff]  ;;  %v802_v23 = vld [vmem:[#allocation8 + $0x128] sm:$0xff] }
  0x85   :  { %2980 = vmatmul.mubr.msk.f32.gmra.mrb[6].mxu0 %vm121_vm0, %v160_v39  ;;  %v797_v21 = vld [vmem:[#allocation8 + $0x100] sm:$0xff]  ;;  %v799_v22 = vld [vmem:[#allocation8 + $0x110] sm:$0xff]  ;;  %v804_v24 = vld [vmem:[#allocation8 + $0x138] sm:$0xff] }
  0x86   :  { %286 = vmatprep.mubr.f32.mxu0 %v4280_v0  ;;  %v618_v25 = vld [vmem:[#allocation2 + $0x3] sm:$0xff]  ;;  %v3568_v26 = vpack.c.bf16 %v799_v22, %v797_v21  ;;  %v3570_v27 = vpack.c.bf16 %v804_v24, %v802_v23  ;;  %v801_v28 = vld [vmem:[#allocation8 + $0x120] sm:$0xff]  ;;  %v619_v30 = vld [vmem:[#allocation2 + $0xb] sm:$0xff] }
  0x87   :  { %v803_v29 = vld [vmem:[#allocation8 + $0x130] sm:$0xff]  ;;  %v620_v32 = vld [vmem:[#allocation2 + $0x13] sm:$0xff]  ;;  %v621_v33 = vld [vmem:[#allocation2 + $0x1b] sm:$0xff] }
  0x88   :  { %v3572_v31 = vpack.c.bf16 %v803_v29, %v801_v28  ;;  %v622_v34 = vld [vmem:[#allocation2 + $0x23] sm:$0xff]  ;;  %v623_v35 = vld [vmem:[#allocation2 + $0x2b] sm:$0xff]  ;;  %v624_v36 = vld [vmem:[#allocation2 + $0x33] sm:$0xff] }
  0x89   :  { %2981 = vmatmul.mubr.msk.f32.gmra.mrb[8].mxu0 %vm121_vm0, %v161_v40  ;;  %v625_v37 = vld [vmem:[#allocation2 + $0x3b] sm:$0xff]  ;;  %v788_v38 = vld [vmem:[#allocation2 + $0x4] sm:$0xff]  ;;  %v789_v39 = vld [vmem:[#allocation2 + $0xc] sm:$0xff] }
  0x8a   :  { %292 = vmatprep.mubr.f32.mxu0 %v4280_v0  ;;  %v790_v40 = vld [vmem:[#allocation2 + $0x14] sm:$0xff]  ;;  %v795_v45 = vld [vmem:[#allocation2 + $0x3c] sm:$0xff]  ;;  %v1109_v11 = vld [vmem:[#allocation10 + $0x190] sm:$0xff] }
  0x8b   :  { %v794_v44 = vld [vmem:[#allocation2 + $0x34] sm:$0xff]  ;;  %v1092_v46 = vld [vmem:[#allocation10 + $0x108] sm:$0xff]  ;;  %v1117_v23 = vld [vmem:[#allocation10 + $0x1d0] sm:$0xff] }
  0x8c   :  { %v1094_v47 = vld [vmem:[#allocation10 + $0x118] sm:$0xff]  ;;  %v1096_v52 = vld [vmem:[#allocation10 + $0x128] sm:$0xff]  ;;  %v1103_v4 = vld [vmem:[#allocation10 + $0x160] sm:$0xff] }
  0x8d   :  { %2982 = vmatmul.mubr.msk.f32.gmra.mrb[10].mxu0 %vm121_vm0, %v162_v41  ;;  %v791_v41 = vld [vmem:[#allocation2 + $0x1c] sm:$0xff]  ;;  %v1098_v53 = vld [vmem:[#allocation10 + $0x138] sm:$0xff]  ;;  %v1121_v29 = vld [vmem:[#allocation10 + $0x1f0] sm:$0xff] }
  0x8e   :  { %298 = vmatprep.mubr.f32.mxu0 %v4280_v0  ;;  %v3578_v54 = vpack.c.bf16 %v1098_v53, %v1096_v52  ;;  %v1104_v1 = vld [vmem:[#allocation10 + $0x168] sm:$0xff]  ;;  %v1106_v2 = vld [vmem:[#allocation10 + $0x178] sm:$0xff]  ;;  %v1107_v10 = vld [vmem:[#allocation10 + $0x180] sm:$0xff] }
  0x8f   :  { %v3586_v3 = vpack.c.bf16 %v1106_v2, %v1104_v1  ;;  %v1110_v8 = vld [vmem:[#allocation10 + $0x198] sm:$0xff]  ;;  %v1115_v22 = vld [vmem:[#allocation10 + $0x1c0] sm:$0xff] }
  0x90   :  { %v3600_v24 = vpack.c.bf16 %v1117_v23, %v1115_v22  ;;  %v1119_v28 = vld [vmem:[#allocation10 + $0x1e0] sm:$0xff] }
  0x91   :  { %2983 = vmatmul.mubr.msk.f32.gmra.mrb[12].mxu0 %vm121_vm0, %v163_v42  ;;  %v792_v42 = vld [vmem:[#allocation2 + $0x24] sm:$0xff] }
  0x92   :  { %304 = vmatprep.mubr.f32.mxu0 %v4280_v0 }
  0x95   :  { %2984 = vmatmul.mubr.msk.f32.gmra.mrb[14].mxu0 %vm121_vm0, %v164_v43  ;;  %v793_v43 = vld [vmem:[#allocation2 + $0x2c] sm:$0xff] }
  0x96   :  { %399 = vmatprep.mubr.f32.mxu0 %v4280_v0 }
  0x99   :  { %2985 = vmatmul.mubr.msk.f32.vlgmr.msra.gmra.mrb[0].mxu0 %vm121_vm0, %v141_v48  ;;  %v3574_v48 = vpack.c.bf16 %v1094_v47, %v1092_v46 }
  0x9a   :  { %405 = vmatprep.mubr.f32.mxu0 %v4280_v0  ;;  %3553 = vmatpush1.bf16.msra.mxu0 %v3552_v49  ;;  %v1091_v49 = vld [vmem:[#allocation10 + $0x100] sm:$0xff] }
  0x9b   :  { %3555 = vmatprep.subr.bf16.mxu0 %v3554_v50  ;;  %v1093_v50 = vld [vmem:[#allocation10 + $0x110] sm:$0xff]  ;;  %3575 = vmatprep.subr.bf16.mxu1 %v3574_v48 }
  0x9c   :  { %v3576_v51 = vpack.c.bf16 %v1093_v50, %v1091_v49 }
  0x9d   :  { %2986 = vmatmul.mubr.msk.f32.gmra.mrb[2].mxu0 %vm121_vm0, %v142_v55  ;;  %v1095_v55 = vld [vmem:[#allocation10 + $0x120] sm:$0xff] }
  0x9e   :  { %411 = vmatprep.mubr.f32.mxu0 %v4280_v0  ;;  %3557 = vmatpush1.bf16.msra.mxu0 %v3556_v56  ;;  %v1097_v56 = vld [vmem:[#allocation10 + $0x130] sm:$0xff] }
  0x9f   :  { %3559 = vmatprep.subr.bf16.mxu0 %v3558_v57  ;;  %3577 = vmatpush1.bf16.msra.mxu1 %v3576_v51  ;;  %v3580_v57 = vpack.c.bf16 %v1097_v56, %v1095_v55 }
  0xa0   :  { %3579 = vmatprep.subr.bf16.mxu1 %v3578_v54 }
  0xa1   :  { %2987 = vmatmul.mubr.msk.f32.gmra.mrb[4].mxu0 %vm121_vm0, %v143_v58  ;;  %v1100_v58 = vld [vmem:[#allocation10 + $0x148] sm:$0xff] }
  0xa2   :  { %417 = vmatprep.mubr.f32.mxu0 %v4280_v0 }
  0xa3   :  { %3581 = vmatpush1.bf16.msra.mxu1 %v3580_v57 }
  0xa5   :  { %2988 = vmatmul.mubr.msk.f32.gmra.mrb[6].mxu0 %vm121_vm0, %v144_v59  ;;  %v1102_v59 = vld [vmem:[#allocation10 + $0x158] sm:$0xff] }
  0xa6   :  { %423 = vmatprep.mubr.f32.mxu0 %v4280_v0 }
  0xa9   :  { %2989 = vmatmul.mubr.msk.f32.gmra.mrb[8].mxu0 %vm121_vm0, %v145_v60  ;;  %v3582_v60 = vpack.c.bf16 %v1102_v59, %v1100_v58 }
  0xaa   :  { %429 = vmatprep.mubr.f32.mxu0 %v4280_v0 }
  0xab   :  { %3583 = vmatprep.subr.bf16.mxu1 %v3582_v60 }
  0xad   :  { %2990 = vmatmul.mubr.msk.f32.gmra.mrb[10].mxu0 %vm121_vm0, %v146_v61  ;;  %v1099_v61 = vld [vmem:[#allocation10 + $0x140] sm:$0xff] }
  0xae   :  { %435 = vmatprep.mubr.f32.mxu0 %v4280_v0 }
  0xb1   :  { %2991 = vmatmul.mubr.msk.f32.gmra.mrb[12].mxu0 %vm121_vm0, %v147_v62  ;;  %v1101_v62 = vld [vmem:[#allocation10 + $0x150] sm:$0xff] }
  0xb2   :  { %441 = vmatprep.mubr.f32.mxu0 %v4280_v0 }
  0xb5   :  { %2992 = vmatmul.mubr.msk.f32.gmra.mrb[14].mxu0 %vm121_vm0, %v148_v63  ;;  %v3584_v63 = vpack.c.bf16 %v1101_v62, %v1099_v61 }
  0xb6   :  { %553 = vmatprep.mubr.f32.mxu0 %v4280_v0 }
  0xb7   :  { %3585 = vmatpush1.bf16.msra.mxu1 %v3584_v63 }
  0xb8   :  { %3587 = vmatprep.subr.bf16.mxu1 %v3586_v3 }
  0xb9   :  { %2993 = vmatmul.mubr.msk.f32.vlgmr.msra.gmra.mrb[0].mxu0 %vm121_vm0, %v448_v5  ;;  %v1105_v5 = vld [vmem:[#allocation10 + $0x170] sm:$0xff] }
  0xba   :  { %559 = vmatprep.mubr.f32.mxu0 %v4280_v0  ;;  %3561 = vmatpush1.bf16.msra.mxu0 %v3560_v6  ;;  %v3588_v6 = vpack.c.bf16 %v1105_v5, %v1103_v4 }
  0xbb   :  { %3563 = vmatprep.subr.bf16.mxu0 %v3562_v7  ;;  %v1108_v7 = vld [vmem:[#allocation10 + $0x188] sm:$0xff] }
  0xbc   :  { %3589 = vmatpush1.bf16.msra.mxu1 %v3588_v6  ;;  %v3590_v9 = vpack.c.bf16 %v1110_v8, %v1108_v7 }
  0xbd   :  { %2994 = vmatmul.mubr.msk.f32.gmra.mrb[2].mxu0 %vm121_vm0, %v449_v12  ;;  %v3592_v12 = vpack.c.bf16 %v1109_v11, %v1107_v10 }
  0xbe   :  { %565 = vmatprep.mubr.f32.mxu0 %v4280_v0  ;;  %3565 = vmatpush1.bf16.msra.mxu0 %v3564_v13  ;;  %v1112_v13 = vld [vmem:[#allocation10 + $0x1a8] sm:$0xff] }
  0xbf   :  { %3567 = vmatprep.subr.bf16.mxu0 %v3566_v14  ;;  %3591 = vmatprep.subr.bf16.mxu1 %v3590_v9  ;;  %v1114_v14 = vld [vmem:[#allocation10 + $0x1b8] sm:$0xff] }
  0xc0   :  { %3593 = vmatpush1.bf16.msra.mxu1 %v3592_v12 }
  0xc1   :  { %2995 = vmatmul.mubr.msk.f32.gmra.mrb[4].mxu0 %vm121_vm0, %v450_v15  ;;  %v3594_v15 = vpack.c.bf16 %v1114_v14, %v1112_v13 }
  0xc2   :  { %571 = vmatprep.mubr.f32.mxu0 %v4280_v0 }
  0xc3   :  { %3595 = vmatprep.subr.bf16.mxu1 %v3594_v15 }
  0xc5   :  { %2996 = vmatmul.mubr.msk.f32.gmra.mrb[6].mxu0 %vm121_vm0, %v451_v16  ;;  %v1111_v16 = vld [vmem:[#allocation10 + $0x1a0] sm:$0xff] }
  0xc6   :  { %577 = vmatprep.mubr.f32.mxu0 %v4280_v0 }
  0xc9   :  { %2997 = vmatmul.mubr.msk.f32.gmra.mrb[8].mxu0 %vm121_vm0, %v452_v17  ;;  %v1113_v17 = vld [vmem:[#allocation10 + $0x1b0] sm:$0xff] }
  0xca   :  { %583 = vmatprep.mubr.f32.mxu0 %v4280_v0 }
  0xcd   :  { %2998 = vmatmul.mubr.msk.f32.gmra.mrb[10].mxu0 %vm121_vm0, %v453_v18  ;;  %v3596_v18 = vpack.c.bf16 %v1113_v17, %v1111_v16 }
  0xce   :  { %589 = vmatprep.mubr.f32.mxu0 %v4280_v0 }
  0xcf   :  { %3597 = vmatpush1.bf16.msra.mxu1 %v3596_v18 }
  0xd1   :  { %2999 = vmatmul.mubr.msk.f32.gmra.mrb[12].mxu0 %vm121_vm0, %v454_v19  ;;  %v1116_v19 = vld [vmem:[#allocation10 + $0x1c8] sm:$0xff] }
  0xd2   :  { %595 = vmatprep.mubr.f32.mxu0 %v4280_v0 }
  0xd5   :  { %3000 = vmatmul.mubr.msk.f32.gmra.mrb[14].mxu0 %vm121_vm0, %v455_v20  ;;  %v1118_v20 = vld [vmem:[#allocation10 + $0x1d8] sm:$0xff] }
  0xd6   :  { %723 = vmatprep.mubr.f32.mxu0 %v4280_v0  ;;  %v3598_v21 = vpack.c.bf16 %v1118_v20, %v1116_v19 }
  0xd8   :  { %3599 = vmatprep.subr.bf16.mxu1 %v3598_v21 }
  0xd9   :  { %3001 = vmatmul.mubr.msk.f32.vlgmr.msra.gmra.mrb[0].mxu0 %vm121_vm0, %v618_v25  ;;  %3601 = vmatpush1.bf16.msra.mxu1 %v3600_v24  ;;  %v1120_v25 = vld [vmem:[#allocation10 + $0x1e8] sm:$0xff] }
  0xda   :  { %729 = vmatprep.mubr.f32.mxu0 %v4280_v0  ;;  %3569 = vmatpush1.bf16.msra.mxu0 %v3568_v26  ;;  %v1122_v26 = vld [vmem:[#allocation10 + $0x1f8] sm:$0xff] }
  0xdb   :  { %3571 = vmatprep.subr.bf16.mxu0 %v3570_v27  ;;  %v3602_v27 = vpack.c.bf16 %v1122_v26, %v1120_v25 }
  0xdd   :  { %3002 = vmatmul.mubr.msk.f32.gmra.mrb[2].mxu0 %vm121_vm0, %v619_v30  ;;  %v3604_v30 = vpack.c.bf16 %v1121_v29, %v1119_v28  ;;  %3603 = vmatprep.subr.bf16.mxu1 %v3602_v27 }
  0xde   :  { %735 = vmatprep.mubr.f32.mxu0 %v4280_v0  ;;  %3573 = vmatpush1.bf16.msra.mxu0 %v3572_v31  ;;  %v1051_v31 = vld [vmem:[#allocation10 + $0x8] sm:$0xff] }
  0xdf   :  { %3605 = vmatpush1.bf16.msra.mxu1 %v3604_v30 }
  0xe1   :  { %3003 = vmatmul.mubr.msk.f32.gmra.mrb[4].mxu0 %vm121_vm0, %v620_v32  ;;  %v1053_v32 = vld [vmem:[#allocation10 + $0x18] sm:$0xff] }
  0xe2   :  { %741 = vmatprep.mubr.f32.mxu0 %v4280_v0 }
  0xe5   :  { %3004 = vmatmul.mubr.msk.f32.gmra.mrb[6].mxu0 %vm121_vm0, %v621_v33  ;;  %v3606_v33 = vpack.c.bf16 %v1053_v32, %v1051_v31 }
  0xe6   :  { %747 = vmatprep.mubr.f32.mxu0 %v4280_v0 }
  0xe7   :  { %3607 = vmatprep.subr.bf16.mxu1 %v3606_v33  ;;  %v1050_v33 = vld [vmem:[#allocation10] sm:$0xff] }
  0xe9   :  { %3005 = vmatmul.mubr.msk.f32.gmra.mrb[8].mxu0 %vm121_vm0, %v622_v34  ;;  %v960_v34 = vlaneseq }
  0xea   :  { %753 = vmatprep.mubr.f32.mxu0 %v4280_v0 }
  0xed   :  { %3006 = vmatmul.mubr.msk.f32.gmra.mrb[10].mxu0 %vm121_vm0, %v623_v35  ;;  %v4528_v35 = vshrl.u32 %v960_v34, 7 }
  0xee   :  { %759 = vmatprep.mubr.f32.mxu0 %v4280_v0 }
  0xf1   :  { %3007 = vmatmul.mubr.msk.f32.gmra.mrb[12].mxu0 %vm121_vm0, %v624_v36  ;;  %v962_v36 = vsub.s32 0, %v4528_v35 }
  0xf2   :  { %765 = vmatprep.mubr.f32.mxu0 %v4280_v0 }
  0xf5   :  { %3008 = vmatmul.mubr.msk.f32.gmra.mrb[14].mxu0 %vm121_vm0, %v625_v37  ;;  %v958_v37 = vld [vmem:[%s4849_s2] sm:$0x3] }
  0xf6   :  { %893 = vmatprep.mubr.f32.mxu0 %v4280_v0 }
  0xf9   :  { %3009 = vmatmul.mubr.msk.f32.vlgmr.msra.gmra.mrb[0].mxu0 %vm121_vm0, %v788_v38  ;;  %v966_v38 = vsub.s32 1, %v4528_v35 }
  0xfa   :  { %899 = vmatprep.mubr.f32.mxu0 %v4280_v0 }
  0xfd   :  { %3010 = vmatmul.mubr.msk.f32.gmra.mrb[2].mxu0 %vm121_vm0, %v789_v39  ;;  %v4537_v39 = vrot.slane %v958_v37, %v962_v36 }
  0xfe   :  { %905 = vmatprep.mubr.f32.mxu0 %v4280_v0 }
 0x101   :  { %3011 = vmatmul.mubr.msk.f32.gmra.mrb[4].mxu0 %vm121_vm0, %v790_v40  ;;  %v4541_v40 = vrot.slane %v958_v37, %v966_v38  ;;  %v1052_v37 = vld [vmem:[#allocation10 + $0x10] sm:$0xff] }
 0x102   :  { %911 = vmatprep.mubr.f32.mxu0 %v4280_v0 }
 0x105   :  { %3012 = vmatmul.mubr.msk.f32.gmra.mrb[6].mxu0 %vm121_vm0, %v791_v41 }
 0x106   :  { %917 = vmatprep.mubr.f32.mxu0 %v4280_v0 }
 0x109   :  { %3013 = vmatmul.mubr.msk.f32.gmra.mrb[8].mxu0 %vm121_vm0, %v792_v42 }
 0x10a   :  { %923 = vmatprep.mubr.f32.mxu0 %v4280_v0 }
 0x10d   :  { %3014 = vmatmul.mubr.msk.f32.gmra.mrb[10].mxu0 %vm121_vm0, %v793_v43 }
 0x10e   :  { %929 = vmatprep.mubr.f32.mxu0 %v4280_v0 }
 0x111   :  { %3015 = vmatmul.mubr.msk.f32.gmra.mrb[12].mxu0 %vm121_vm0, %v794_v44 }
 0x112   :  { %935 = vmatprep.mubr.f32.mxu0 %v4280_v0 }
 0x115   :  { %3016 = vmatmul.mubr.msk.f32.gmra.mrb[14].mxu0 %vm121_vm0, %v795_v45 }
 0x1cc   :  { %v895_v41 = vpop.f32.mrb[0].mxu0 }
 0x1cd   :  { %v970_v42 = vadd.f32 %v4537_v39, %v895_v41  ;;  %v897_v43 = vpop.f32.mrb[1].mxu0 }
 0x1ce   :  { %v971_v44 = vadd.f32 %v4541_v40, %v897_v43  ;;  %v1055_v43 = vld [vmem:[#allocation10 + $0x28] sm:$0xff] }
 0x1cf   :  { %v986_v45 = vmax.f32 %v970_v42, 0.0 }
 0x1d0   :  { %v987_v46 = vmax.f32 %v971_v44, 0.0  ;;  %v901_v47 = vpop.f32.mrb[2].mxu0  ;;  %v1057_v44 = vld [vmem:[#allocation10 + $0x38] sm:$0xff] }
 0x1d1   :  { %v972_v48 = vadd.f32 %v4537_v39, %v901_v47  ;;  %v903_v49 = vpop.f32.mrb[3].mxu0 }
 0x1d2   :  { %v1002_v50 = vmax.f32 %v986_v45, %v987_v46  ;;  %v973_v51 = vadd.f32 %v4541_v40, %v903_v49  ;;  %v3608_v49 = vpack.c.bf16 %v1052_v37, %v1050_v33 }
 0x1d3   :  { %v988_v52 = vmax.f32 %v972_v48, 0.0 }
 0x1d4   :  { %1010 = vst [vmem:[#allocation3] sm:$0xff] %v1002_v50  ;;  %v989_v53 = vmax.f32 %v973_v51, 0.0  ;;  %v907_v54 = vpop.f32.mrb[4].mxu0 }
 0x1d5   :  { %v974_v55 = vadd.f32 %v4537_v39, %v907_v54  ;;  %v909_v56 = vpop.f32.mrb[5].mxu0  ;;  %v1056_v54 = vld [vmem:[#allocation10 + $0x30] sm:$0xff] }
 0x1d6   :  { %v1003_v57 = vmax.f32 %v988_v52, %v989_v53  ;;  %v975_v58 = vadd.f32 %v4541_v40, %v909_v56  ;;  %v3610_v52 = vpack.c.bf16 %v1057_v44, %v1055_v43  ;;  %v1054_v53 = vld [vmem:[#allocation10 + $0x20] sm:$0xff]  ;;  %v1061_v56 = vld [vmem:[#allocation10 + $0x58] sm:$0xff]  ;;  %v1079_v44 = vld [vmem:[#allocation10 + $0xe8] sm:$0xff] }
 0x1d7   :  { %v990_v59 = vmax.f32 %v974_v55, 0.0 }
 0x1d8   :  { %1011 = vst [vmem:[#allocation3 + $0x8] sm:$0xff] %v1003_v57  ;;  %v991_v60 = vmax.f32 %v975_v58, 0.0  ;;  %v913_v61 = vpop.f32.mrb[6].mxu0 }
 0x1d9   :  { %v976_v62 = vadd.f32 %v4537_v39, %v913_v61  ;;  %v915_v63 = vpop.f32.mrb[7].mxu0  ;;  %v1058_v61 = vld [vmem:[#allocation10 + $0x40] sm:$0xff] }
 0x1da   :  { %v1004_v1 = vmax.f32 %v990_v59, %v991_v60  ;;  %v977_v2 = vadd.f32 %v4541_v40, %v915_v63 }
 0x1db   :  { %v992_v3 = vmax.f32 %v976_v62, 0.0  ;;  %v1060_v62 = vld [vmem:[#allocation10 + $0x50] sm:$0xff] }
 0x1dc   :  { %1012 = vst [vmem:[#allocation3 + $0x10] sm:$0xff] %v1004_v1  ;;  %v993_v4 = vmax.f32 %v977_v2, 0.0  ;;  %v919_v5 = vpop.f32.mrb[8].mxu0  ;;  %v1065_v2 = vld [vmem:[#allocation10 + $0x78] sm:$0xff] }
 0x1dd   :  { %v978_v6 = vadd.f32 %v4537_v39, %v919_v5  ;;  %v921_v7 = vpop.f32.mrb[9].mxu0 }
 0x1de   :  { %v1005_v8 = vmax.f32 %v992_v3, %v993_v4  ;;  %v979_v9 = vadd.f32 %v4541_v40, %v921_v7  ;;  %v3616_v4 = vpack.c.bf16 %v1060_v62, %v1058_v61  ;;  %v1062_v7 = vld [vmem:[#allocation10 + $0x60] sm:$0xff] }
 0x1df   :  { %v1018_v10 = vld [vmem:[#allocation3 + $0x1] sm:$0xff]  ;;  %v994_v11 = vmax.f32 %v978_v6, 0.0  ;;  %v1362_v62 = vld [vmem:[#allocation10 + $0x220] sm:$0xff] }
 0x1e0   :  { %v4553_v12 = vmax.f32 %v1002_v50, %v1018_v10  ;;  %1013 = vst [vmem:[#allocation3 + $0x18] sm:$0xff] %v1005_v8  ;;  %v995_v13 = vmax.f32 %v979_v9, 0.0  ;;  %v925_v14 = vpop.f32.mrb[10].mxu0  ;;  %v1067_v10 = vld [vmem:[#allocation10 + $0x88] sm:$0xff] }
 0x1e1   :  { %v980_v15 = vadd.f32 %v4537_v39, %v925_v14  ;;  %v927_v16 = vpop.f32.mrb[11].mxu0 }
 0x1e2   :  { %1034 = vst [vmem:[#allocation3] sm:$0xff] %v4553_v12  ;;  %v1006_v17 = vmax.f32 %v994_v11, %v995_v13  ;;  %v981_v18 = vadd.f32 %v4541_v40, %v927_v16  ;;  %v1069_v11 = vld [vmem:[#allocation10 + $0x98] sm:$0xff] }
 0x1e3   :  { %v1019_v19 = vld [vmem:[#allocation3 + $0x9] sm:$0xff]  ;;  %v996_v20 = vmax.f32 %v980_v15, 0.0 }
 0x1e4   :  { %v4558_v21 = vmax.f32 %v1003_v57, %v1019_v19  ;;  %1014 = vst [vmem:[#allocation3 + $0x20] sm:$0xff] %v1006_v17  ;;  %v997_v22 = vmax.f32 %v981_v18, 0.0  ;;  %v931_v23 = vpop.f32.mrb[12].mxu0  ;;  %v3622_v18 = vpack.c.bf16 %v1069_v11, %v1067_v10  ;;  %v1066_v19 = vld [vmem:[#allocation10 + $0x80] sm:$0xff] }
 0x1e5   :  { %v982_v24 = vadd.f32 %v4537_v39, %v931_v23  ;;  %v933_v25 = vpop.f32.mrb[13].mxu0  ;;  %v1071_v23 = vld [vmem:[#allocation10 + $0xa8] sm:$0xff] }
 0x1e6   :  { %1035 = vst [vmem:[#allocation3 + $0x8] sm:$0xff] %v4558_v21  ;;  %v1007_v26 = vmax.f32 %v996_v20, %v997_v22  ;;  %v983_v27 = vadd.f32 %v4541_v40, %v933_v25  ;;  %v1068_v20 = vld [vmem:[#allocation10 + $0x90] sm:$0xff] }
 0x1e7   :  { %v1020_v28 = vld [vmem:[#allocation3 + $0x11] sm:$0xff]  ;;  %v998_v29 = vmax.f32 %v982_v24, 0.0  ;;  %v1073_v24 = vld [vmem:[#allocation10 + $0xb8] sm:$0xff]  ;;  %v3624_v25 = vpack.c.bf16 %v1068_v20, %v1066_v19 }
 0x1e8   :  { %v4563_v30 = vmax.f32 %v1004_v1, %v1020_v28  ;;  %1015 = vst [vmem:[#allocation3 + $0x28] sm:$0xff] %v1007_v26  ;;  %v999_v31 = vmax.f32 %v983_v27, 0.0  ;;  %v937_v32 = vpop.f32.mrb[14].mxu0  ;;  %v1063_v1 = vld [vmem:[#allocation10 + $0x68] sm:$0xff]  ;;  %v1070_v27 = vld [vmem:[#allocation10 + $0xa0] sm:$0xff]  ;;  %v1072_v28 = vld [vmem:[#allocation10 + $0xb0] sm:$0xff] }
 0x1e9   :  { %v984_v41 = vadd.f32 %v4537_v39, %v937_v32  ;;  %v939_v42 = vpop.f32.mrb[15].mxu0  ;;  %v1059_v39 = vld [vmem:[#allocation10 + $0x48] sm:$0xff]  ;;  %v3618_v6 = vpack.c.bf16 %v1065_v2, %v1063_v1  ;;  %v1077_v32 = vld [vmem:[#allocation10 + $0xd8] sm:$0xff]  ;;  %v3628_v33 = vpack.c.bf16 %v1072_v28, %v1070_v27  ;;  %v1374_v20 = vld [vmem:[#allocation10 + $0x280] sm:$0xff] }
 0x1ea   :  { %1036 = vst [vmem:[#allocation3 + $0x10] sm:$0xff] %v4563_v30  ;;  %v1008_v45 = vmax.f32 %v998_v29, %v999_v31  ;;  %v985_v46 = vadd.f32 %v4541_v40, %v939_v42  ;;  %v3612_v40 = vpack.c.bf16 %v1056_v54, %v1054_v53  ;;  %v3614_v60 = vpack.c.bf16 %v1061_v56, %v1059_v39  ;;  %v1075_v31 = vld [vmem:[#allocation10 + $0xc8] sm:$0xff]  ;;  %v1076_v42 = vld [vmem:[#allocation10 + $0xd0] sm:$0xff]  ;;  %v1361_v53 = vld [vmem:[#allocation10 + $0x218] sm:$0xff] }
 0x1eb   :  { %v1021_v47 = vld [vmem:[#allocation3 + $0x19] sm:$0xff]  ;;  %v1000_v48 = vmax.f32 %v984_v41, 0.0  ;;  %v3630_v37 = vpack.c.bf16 %v1077_v32, %v1075_v31  ;;  %v1074_v41 = vld [vmem:[#allocation10 + $0xc0] sm:$0xff]  ;;  %v1369_v2 = vld [vmem:[#allocation10 + $0x258] sm:$0xff] }
 0x1ec   :  { %v4568_v50 = vmax.f32 %v1005_v8, %v1021_v47  ;;  %1016 = vst [vmem:[#allocation3 + $0x30] sm:$0xff] %v1008_v45  ;;  %v1001_v51 = vmax.f32 %v985_v46, 0.0  ;;  %v1064_v8 = vld [vmem:[#allocation10 + $0x70] sm:$0xff]  ;;  %v3632_v46 = vpack.c.bf16 %v1076_v42, %v1074_v41  ;;  %v1358_v39 = vld [vmem:[#allocation10 + $0x200] sm:$0xff]  ;;  %v1367_v1 = vld [vmem:[#allocation10 + $0x248] sm:$0xff] }
 0x1ed   :  { %v1082_v55 = vld [vmem:[#allocation3 + $0x2] sm:$0xff]  ;;  %v3620_v15 = vpack.c.bf16 %v1064_v8, %v1062_v7  ;;  %v1371_v8 = vld [vmem:[#allocation10 + $0x268] sm:$0xff]  ;;  %v1378_v28 = vld [vmem:[#allocation10 + $0x2a0] sm:$0xff] }
 0x1ee   :  { %1037 = vst [vmem:[#allocation3 + $0x18] sm:$0xff] %v4568_v50  ;;  %v1009_v57 = vmax.f32 %v1000_v48, %v1001_v51  ;;  %1188 = vmatmul.mubr.f32.vlgmr.msra.gmra.mrb[0].mxu1 %v1082_v55  ;;  %v1078_v48 = vld [vmem:[#allocation10 + $0xe0] sm:$0xff]  ;;  %v1360_v56 = vld [vmem:[#allocation10 + $0x210] sm:$0xff]  ;;  %v1385_v31 = vld [vmem:[#allocation10 + $0x2d8] sm:$0xff] }
 0x1ef   :  { %v1022_v58 = vld [vmem:[#allocation3 + $0x21] sm:$0xff]  ;;  %3609 = vmatpush1.bf16.msra.mxu1 %v3608_v49  ;;  %1193 = vmatprep.mubr.f32.mxu1 %v4280_v0  ;;  %v1387_v42 = vld [vmem:[#allocation10 + $0x2e8] sm:$0xff] }
 0x1f0   :  { %v4572_v59 = vmax.f32 %v1006_v17, %v1022_v58  ;;  %1017 = vst [vmem:[#allocation3 + $0x38] sm:$0xff] %v1009_v57  ;;  %3611 = vmatprep.subr.bf16.mxu1 %v3610_v52  ;;  %v1080_v49 = vld [vmem:[#allocation10 + $0xf0] sm:$0xff]  ;;  %v1359_v52 = vld [vmem:[#allocation10 + $0x208] sm:$0xff] }
 0x1f1   :  { %v1083_v63 = vld [vmem:[#allocation3 + $0xa] sm:$0xff]  ;;  %v3636_v54 = vpack.c.bf16 %v1080_v49, %v1078_v48  ;;  %v3638_v55 = vpack.c.bf16 %v1361_v53, %v1359_v52  ;;  %v1363_v58 = vld [vmem:[#allocation10 + $0x228] sm:$0xff]  ;;  %v1368_v7 = vld [vmem:[#allocation10 + $0x250] sm:$0xff] }
 0x1f2   :  { %1038 = vst [vmem:[#allocation3 + $0x20] sm:$0xff] %v4572_v59  ;;  %1194 = vmatmul.mubr.f32.gmra.mrb[2].mxu1 %v1083_v63  ;;  %v1364_v63 = vld [vmem:[#allocation10 + $0x230] sm:$0xff]  ;;  %v1529_v48 = vld [vmem:[#allocation10 + $0x308] sm:$0xff]  ;;  %v1531_v49 = vld [vmem:[#allocation10 + $0x318] sm:$0xff] }
 0x1f3   :  { %v1023_v3 = vld [vmem:[#allocation3 + $0x29] sm:$0xff]  ;;  %3613 = vmatpush1.bf16.msra.mxu1 %v3612_v40  ;;  %1199 = vmatprep.mubr.f32.mxu1 %v4280_v0  ;;  %v1384_v41 = vld [vmem:[#allocation10 + $0x2d0] sm:$0xff]  ;;  %v3670_v52 = vpack.c.bf16 %v1531_v49, %v1529_v48 }
 0x1f4   :  { %v4576_v5 = vmax.f32 %v1007_v26, %v1023_v3  ;;  %3615 = vmatprep.subr.bf16.mxu1 %v3614_v60  ;;  %v3626_v26 = vpack.c.bf16 %v1073_v24, %v1071_v23  ;;  %v1365_v40 = vld [vmem:[#allocation10 + $0x238] sm:$0xff]  ;;  %v3640_v60 = vpack.c.bf16 %v1360_v56, %v1358_v39  ;;  %v3644_v3 = vpack.c.bf16 %v1364_v63, %v1362_v62  ;;  %v1379_v23 = vld [vmem:[#allocation10 + $0x2a8] sm:$0xff]  ;;  %v1528_v53 = vld [vmem:[#allocation10 + $0x300] sm:$0xff] }
 0x1f5   :  { %v1084_v9 = vld [vmem:[#allocation3 + $0x12] sm:$0xff]  ;;  %v3642_v61 = vpack.c.bf16 %v1365_v40, %v1363_v58  ;;  %v1381_v24 = vld [vmem:[#allocation10 + $0x2b8] sm:$0xff]  ;;  %v1534_v40 = vld [vmem:[#allocation10 + $0x330] sm:$0xff] }
 0x1f6   :  { %1039 = vst [vmem:[#allocation3 + $0x28] sm:$0xff] %v4576_v5  ;;  %1200 = vmatmul.mubr.f32.gmra.mrb[4].mxu1 %v1084_v9  ;;  %v1373_v9 = vld [vmem:[#allocation10 + $0x278] sm:$0xff]  ;;  %v3658_v27 = vpack.c.bf16 %v1381_v24, %v1379_v23  ;;  %v1532_v58 = vld [vmem:[#allocation10 + $0x320] sm:$0xff]  ;;  %v1549_v23 = vld [vmem:[#allocation10 + $0x3a8] sm:$0xff] }
 0x1f7   :  { %v1024_v13 = vld [vmem:[#allocation3 + $0x31] sm:$0xff]  ;;  %v1025_v14 = vld [vmem:[#allocation3 + $0x39] sm:$0xff]  ;;  %3617 = vmatpush1.bf16.msra.mxu1 %v3616_v4  ;;  %1205 = vmatprep.mubr.f32.mxu1 %v4280_v0  ;;  %v3646_v4 = vpack.c.bf16 %v1369_v2, %v1367_v1  ;;  %v3650_v11 = vpack.c.bf16 %v1373_v9, %v1371_v8  ;;  %v1535_v39 = vld [vmem:[#allocation10 + $0x338] sm:$0xff]  ;;  %v3676_v63 = vpack.c.bf16 %v1534_v40, %v1532_v58 }
 0x1f8   :  { %v4580_v16 = vmax.f32 %v1008_v45, %v1024_v13  ;;  %v4582_v17 = vmax.f32 %v1009_v57, %v1025_v14  ;;  %3619 = vmatprep.subr.bf16.mxu1 %v3618_v6  ;;  %v1081_v45 = vld [vmem:[#allocation10 + $0xf8] sm:$0xff]  ;;  %v1366_v6 = vld [vmem:[#allocation10 + $0x240] sm:$0xff]  ;;  %v1375_v14 = vld [vmem:[#allocation10 + $0x288] sm:$0xff] }
 0x1f9   :  { %v1085_v22 = vld [vmem:[#allocation3 + $0x1a] sm:$0xff]  ;;  %v3634_v47 = vpack.c.bf16 %v1081_v45, %v1079_v44  ;;  %v3648_v10 = vpack.c.bf16 %v1368_v7, %v1366_v6  ;;  %v1370_v13 = vld [vmem:[#allocation10 + $0x260] sm:$0xff]  ;;  %v1539_v62 = vld [vmem:[#allocation10 + $0x358] sm:$0xff] }
 0x1fa   :  { %1040 = vst [vmem:[#allocation3 + $0x30] sm:$0xff] %v4580_v16  ;;  %1041 = vst [vmem:[#allocation3 + $0x38] sm:$0xff] %v4582_v17  ;;  %1206 = vmatmul.mubr.f32.gmra.mrb[6].mxu1 %v1085_v22  ;;  %v1376_v22 = vld [vmem:[#allocation10 + $0x290] sm:$0xff]  ;;  %v1536_v2 = vld [vmem:[#allocation10 + $0x340] sm:$0xff] }
 0x1fb   :  { %3621 = vmatpush1.bf16.msra.mxu1 %v3620_v15  ;;  %1211 = vmatprep.mubr.f32.mxu1 %v4280_v0  ;;  %v1377_v15 = vld [vmem:[#allocation10 + $0x298] sm:$0xff]  ;;  %v1541_v6 = vld [vmem:[#allocation10 + $0x368] sm:$0xff]  ;;  %v1556_v48 = vld [vmem:[#allocation10 + $0x3e0] sm:$0xff] }
 0x1fc   :  { %3623 = vmatprep.subr.bf16.mxu1 %v3622_v18  ;;  %v3654_v19 = vpack.c.bf16 %v1377_v15, %v1375_v14  ;;  %v1543_v7 = vld [vmem:[#allocation10 + $0x378] sm:$0xff]  ;;  %v1558_v49 = vld [vmem:[#allocation10 + $0x3f0] sm:$0xff]  ;;  %v1703_v58 = vld [vmem:[#allocation10 + $0x428] sm:$0xff] }
 0x1fd   :  { %v1086_v29 = vld [vmem:[#allocation3 + $0x22] sm:$0xff]  ;;  %v3682_v9 = vpack.c.bf16 %v1543_v7, %v1541_v6  ;;  %v1706_v7 = vld [vmem:[#allocation10 + $0x440] sm:$0xff] }
 0x1fe   :  { %1212 = vmatmul.mubr.f32.gmra.mrb[8].mxu1 %v1086_v29  ;;  %v1380_v29 = vld [vmem:[#allocation10 + $0x2b0] sm:$0xff]  ;;  %v1547_v14 = vld [vmem:[#allocation10 + $0x398] sm:$0xff] }
 0x1ff   :  { %3625 = vmatpush1.bf16.msra.mxu1 %v3624_v25  ;;  %1217 = vmatprep.mubr.f32.mxu1 %v4280_v0  ;;  %v4598_v25 = vld [vmem:[#allocation3 + $0x40] sm:$0xff]  ;;  %v3660_v32 = vpack.c.bf16 %v1380_v29, %v1378_v28  ;;  %v1551_v24 = vld [vmem:[#allocation10 + $0x3b8] sm:$0xff]  ;;  %v1548_v28 = vld [vmem:[#allocation10 + $0x3a0] sm:$0xff] }
 0x200   :  { %3627 = vmatprep.subr.bf16.mxu1 %v3626_v26  ;;  %v3656_v26 = vpack.c.bf16 %v1376_v22, %v1374_v20  ;;  %v1546_v20 = vld [vmem:[#allocation10 + $0x390] sm:$0xff]  ;;  %v1705_v40 = vld [vmem:[#allocation10 + $0x438] sm:$0xff]  ;;  %3210 = vmatprep.mubr.msk.f32.mxu0 %vm4282_vm1, %v4598_v25 }
 0x201   :  { %v1087_v43 = vld [vmem:[#allocation3 + $0x2a] sm:$0xff]  ;;  %v1088_v51 = vld [vmem:[#allocation3 + $0x32] sm:$0xff]  ;;  %v1089_v57 = vld [vmem:[#allocation3 + $0x3a] sm:$0xff] }
 0x202   :  { %1218 = vmatmul.mubr.f32.gmra.mrb[10].mxu1 %v1087_v43  ;;  %v1389_v43 = vld [vmem:[#allocation10 + $0x2f8] sm:$0xff]  ;;  %v1352_v22 = vld [vmem:[#allocation3 + $0x1c] sm:$0xff] }
 0x203   :  { %3629 = vmatpush1.bf16.msra.mxu1 %v3628_v33  ;;  %1223 = vmatprep.mubr.f32.mxu1 %v4280_v0  ;;  %v3666_v45 = vpack.c.bf16 %v1389_v43, %v1387_v42  ;;  %v1550_v29 = vld [vmem:[#allocation10 + $0x3b0] sm:$0xff]  ;;  %v1354_v43 = vld [vmem:[#allocation3 + $0x2c] sm:$0xff] }
 0x204   :  { %3631 = vmatprep.subr.bf16.mxu1 %v3630_v37  ;;  %v1382_v37 = vld [vmem:[#allocation10 + $0x2c0] sm:$0xff]  ;;  %v1554_v42 = vld [vmem:[#allocation10 + $0x3d0] sm:$0xff] }
 0x205   :  { %v3664_v44 = vpack.c.bf16 %v1384_v41, %v1382_v37  ;;  %v1552_v41 = vld [vmem:[#allocation10 + $0x3c0] sm:$0xff] }
 0x206   :  { %1224 = vmatmul.mubr.f32.gmra.mrb[12].mxu1 %v1088_v51 }
 0x207   :  { %3633 = vmatpush1.bf16.msra.mxu1 %v3632_v46  ;;  %1229 = vmatprep.mubr.f32.mxu1 %v4280_v0  ;;  %v1386_v46 = vld [vmem:[#allocation10 + $0x2e0] sm:$0xff] }
 0x208   :  { %3635 = vmatprep.subr.bf16.mxu1 %v3634_v47  ;;  %v1388_v47 = vld [vmem:[#allocation10 + $0x2f0] sm:$0xff] }
 0x209   :  { %v3668_v51 = vpack.c.bf16 %v1388_v47, %v1386_v46  ;;  %v3696_v46 = vpack.c.bf16 %v1554_v42, %v1552_v41  ;;  %v1723_v41 = vld [vmem:[#allocation10 + $0x4c8] sm:$0xff]  ;;  %v1725_v42 = vld [vmem:[#allocation10 + $0x4d8] sm:$0xff] }
 0x20a   :  { %1230 = vmatmul.mubr.f32.gmra.mrb[14].mxu1 %v1089_v57 }
 0x20b   :  { %3637 = vmatpush1.bf16.msra.mxu1 %v3636_v54  ;;  %1300 = vmatprep.mubr.f32.mxu1 %v4280_v0  ;;  %v1530_v54 = vld [vmem:[#allocation10 + $0x310] sm:$0xff] }
 0x20c   :  { %3639 = vmatprep.subr.bf16.mxu1 %v3638_v55  ;;  %v1533_v55 = vld [vmem:[#allocation10 + $0x328] sm:$0xff]  ;;  %v3672_v56 = vpack.c.bf16 %v1530_v54, %v1528_v53  ;;  %v1701_v53 = vld [vmem:[#allocation10 + $0x418] sm:$0xff]  ;;  %v3700_v54 = vpack.c.bf16 %v1558_v49, %v1556_v48 }
 0x20d   :  { %v3674_v57 = vpack.c.bf16 %v1535_v39, %v1533_v55  ;;  %v1698_v39 = vld [vmem:[#allocation10 + $0x400] sm:$0xff]  ;;  %v1727_v48 = vld [vmem:[#allocation10 + $0x4e8] sm:$0xff]  ;;  %v1729_v49 = vld [vmem:[#allocation10 + $0x4f8] sm:$0xff] }
 0x20e   :  { %1301 = vmatmul.mubr.f32.vlgmr.msra.gmra.mrb[0].mxu1 %v4553_v12  ;;  %v1372_v12 = vld [vmem:[#allocation10 + $0x270] sm:$0xff] }
 0x20f   :  { %3641 = vmatpush1.bf16.msra.mxu1 %v3640_v60  ;;  %1306 = vmatprep.mubr.f32.mxu1 %v4280_v0  ;;  %v3652_v18 = vpack.c.bf16 %v1372_v12, %v1370_v13  ;;  %v1349_v60 = vld [vmem:[#allocation3 + $0x4] sm:$0xff]  ;;  %v1351_v13 = vld [vmem:[#allocation3 + $0x14] sm:$0xff] }
 0x210   :  { %3643 = vmatprep.subr.bf16.mxu1 %v3642_v61  ;;  %v1537_v61 = vld [vmem:[#allocation10 + $0x348] sm:$0xff] }
 0x211   :  { %v3678_v1 = vpack.c.bf16 %v1539_v62, %v1537_v61  ;;  %v1545_v12 = vld [vmem:[#allocation10 + $0x388] sm:$0xff]  ;;  %v3706_v61 = vpack.c.bf16 %v1705_v40, %v1703_v58  ;;  %v1702_v62 = vld [vmem:[#allocation10 + $0x420] sm:$0xff] }
 0x212   :  { %1307 = vmatmul.mubr.f32.gmra.mrb[2].mxu1 %v4558_v21  ;;  %v2116_v58 = vld [vmem:[#allocation11 + $0xa8] sm:$0xff] }
 0x213   :  { %3645 = vmatpush1.bf16.msra.mxu1 %v3644_v3  ;;  %1312 = vmatprep.mubr.f32.mxu1 %v4280_v0  ;;  %v1538_v3 = vld [vmem:[#allocation10 + $0x350] sm:$0xff] }
 0x214   :  { %3647 = vmatprep.subr.bf16.mxu1 %v3646_v4  ;;  %v1350_v4 = vld [vmem:[#allocation3 + $0xc] sm:$0xff]  ;;  %v3680_v8 = vpack.c.bf16 %v1538_v3, %v1536_v2  ;;  %v1707_v2 = vld [vmem:[#allocation10 + $0x448] sm:$0xff] }
 0x215   :  { %v1709_v3 = vld [vmem:[#allocation10 + $0x458] sm:$0xff] }
 0x216   :  { %1313 = vmatmul.mubr.f32.gmra.mrb[4].mxu1 %v4563_v30  ;;  %v3710_v6 = vpack.c.bf16 %v1709_v3, %v1707_v2 }
 0x217   :  { %3649 = vmatpush1.bf16.msra.mxu1 %v3648_v10  ;;  %1318 = vmatprep.mubr.f32.mxu1 %v4280_v0  ;;  %v1383_v0 = vld [vmem:[#allocation10 + $0x2c8] sm:$0xff]  ;;  %v1540_v10 = vld [vmem:[#allocation10 + $0x360] sm:$0xff] }
 0x218   :  { %3651 = vmatprep.subr.bf16.mxu1 %v3650_v11  ;;  %v3662_v33 = vpack.c.bf16 %v1385_v31, %v1383_v0  ;;  %v1542_v11 = vld [vmem:[#allocation10 + $0x370] sm:$0xff]  ;;  %v1553_v31 = vld [vmem:[#allocation10 + $0x3c8] sm:$0xff] }
 0x219   :  { %v3684_v15 = vpack.c.bf16 %v1542_v11, %v1540_v10  ;;  %v1353_v0 = vld [vmem:[#allocation3 + $0x24] sm:$0xff]  ;;  %v1711_v10 = vld [vmem:[#allocation10 + $0x468] sm:$0xff] }
 0x21a   :  { %1319 = vmatmul.mubr.f32.gmra.mrb[6].mxu1 %v4568_v50  ;;  %v1713_v11 = vld [vmem:[#allocation10 + $0x478] sm:$0xff] }
 0x21b   :  { %3653 = vmatpush1.bf16.msra.mxu1 %v3652_v18  ;;  %1324 = vmatprep.mubr.f32.mxu1 %v4598_v25  ;;  %v3686_v18 = vpack.c.bf16 %v1547_v14, %v1545_v12  ;;  %v3714_v12 = vpack.c.bf16 %v1713_v11, %v1711_v10  ;;  %v1710_v14 = vld [vmem:[#allocation10 + $0x460] sm:$0xff] }
 0x21c   :  { %3655 = vmatprep.subr.bf16.mxu1 %v3654_v19  ;;  %v1544_v19 = vld [vmem:[#allocation10 + $0x380] sm:$0xff] }
 0x21e   :  { %1325 = vmatmul.mubr.f32.gmra.mrb[8].mxu1 %v4572_v59 }
 0x21f   :  { %3657 = vmatpush1.bf16.msra.mxu1 %v3656_v26  ;;  %1330 = vmatprep.mubr.f32.mxu1 %v4598_v25  ;;  %v3688_v26 = vpack.c.bf16 %v1546_v20, %v1544_v19  ;;  %v1715_v19 = vld [vmem:[#allocation10 + $0x488] sm:$0xff]  ;;  %v1717_v20 = vld [vmem:[#allocation10 + $0x498] sm:$0xff] }
 0x220   :  { %3659 = vmatprep.subr.bf16.mxu1 %v3658_v27  ;;  %v3690_v27 = vpack.c.bf16 %v1551_v24, %v1549_v23  ;;  %v3718_v23 = vpack.c.bf16 %v1717_v20, %v1715_v19  ;;  %v1714_v24 = vld [vmem:[#allocation10 + $0x480] sm:$0xff] }
 0x222   :  { %1331 = vmatmul.mubr.f32.gmra.mrb[10].mxu1 %v4576_v5 }
 0x223   :  { %3661 = vmatpush1.bf16.msra.mxu1 %v3660_v32  ;;  %1336 = vmatprep.mubr.f32.mxu1 %v4598_v25  ;;  %v1555_v32 = vld [vmem:[#allocation10 + $0x3d8] sm:$0xff] }
 0x224   :  { %3663 = vmatprep.subr.bf16.mxu1 %v3662_v33  ;;  %v3692_v33 = vpack.c.bf16 %v1550_v29, %v1548_v28  ;;  %v3694_v37 = vpack.c.bf16 %v1555_v32, %v1553_v31  ;;  %v1719_v28 = vld [vmem:[#allocation10 + $0x4a8] sm:$0xff]  ;;  %v1721_v29 = vld [vmem:[#allocation10 + $0x4b8] sm:$0xff]  ;;  %v1718_v32 = vld [vmem:[#allocation10 + $0x4a0] sm:$0xff] }
 0x225   :  { %v3722_v31 = vpack.c.bf16 %v1721_v29, %v1719_v28 }
 0x226   :  { %1337 = vmatmul.mubr.f32.gmra.mrb[12].mxu1 %v4580_v16 }
 0x227   :  { %3665 = vmatpush1.bf16.msra.mxu1 %v3664_v44  ;;  %1342 = vmatprep.mubr.f32.mxu1 %v4598_v25  ;;  %v1557_v44 = vld [vmem:[#allocation10 + $0x3e8] sm:$0xff] }
 0x228   :  { %3667 = vmatprep.subr.bf16.mxu1 %v3666_v45  ;;  %v1559_v45 = vld [vmem:[#allocation10 + $0x3f8] sm:$0xff] }
 0x229   :  { %v3698_v47 = vpack.c.bf16 %v1559_v45, %v1557_v44  ;;  %v3726_v44 = vpack.c.bf16 %v1725_v42, %v1723_v41  ;;  %v1722_v45 = vld [vmem:[#allocation10 + $0x4c0] sm:$0xff] }
 0x22a   :  { %1343 = vmatmul.mubr.f32.gmra.mrb[14].mxu1 %v4582_v17 }
 0x22b   :  { %3669 = vmatpush1.bf16.msra.mxu1 %v3668_v51  ;;  %1454 = vmatprep.mubr.f32.mxu1 %v4598_v25  ;;  %v1355_v51 = vld [vmem:[#allocation3 + $0x34] sm:$0xff] }
 0x22c   :  { %3671 = vmatprep.subr.bf16.mxu1 %v3670_v52  ;;  %v1699_v52 = vld [vmem:[#allocation10 + $0x408] sm:$0xff] }
 0x22d   :  { %v3702_v55 = vpack.c.bf16 %v1701_v53, %v1699_v52  ;;  %v3730_v52 = vpack.c.bf16 %v1729_v49, %v1727_v48  ;;  %v1726_v53 = vld [vmem:[#allocation10 + $0x4e0] sm:$0xff] }
 0x22e   :  { %1455 = vmatmul.mubr.f32.vlgmr.msra.gmra.mrb[0].mxu1 %v1349_v60 }
 0x22f   :  { %3673 = vmatpush1.bf16.msra.mxu1 %v3672_v56  ;;  %1460 = vmatprep.mubr.f32.mxu1 %v4598_v25  ;;  %v1700_v56 = vld [vmem:[#allocation10 + $0x410] sm:$0xff] }
 0x230   :  { %3675 = vmatprep.subr.bf16.mxu1 %v3674_v57  ;;  %v1356_v57 = vld [vmem:[#allocation3 + $0x3c] sm:$0xff]  ;;  %v3704_v60 = vpack.c.bf16 %v1700_v56, %v1698_v39 }
 0x231   :  { %v1526_v56 = vld [vmem:[#allocation3 + $0x3e] sm:$0xff] }
 0x232   :  { %1461 = vmatmul.mubr.f32.gmra.mrb[2].mxu1 %v1350_v4 }
 0x233   :  { %3677 = vmatpush1.bf16.msra.mxu1 %v3676_v63  ;;  %1466 = vmatprep.mubr.f32.mxu1 %v4598_v25  ;;  %v1704_v63 = vld [vmem:[#allocation10 + $0x430] sm:$0xff] }
 0x234   :  { %3679 = vmatprep.subr.bf16.mxu1 %v3678_v1  ;;  %v1519_v1 = vld [vmem:[#allocation3 + $0x6] sm:$0xff]  ;;  %v3708_v4 = vpack.c.bf16 %v1704_v63, %v1702_v62  ;;  %v1859_v63 = vld [vmem:[%s4851_s4] sm:$0x3] }
 0x235   :  { %v4659_v2 = vrot.slane %v1859_v63, %v966_v38 }
 0x236   :  { %1467 = vmatmul.mubr.f32.gmra.mrb[4].mxu1 %v1351_v13 }
 0x237   :  { %3681 = vmatpush1.bf16.msra.mxu1 %v3680_v8  ;;  %1472 = vmatprep.mubr.f32.mxu1 %v4598_v25  ;;  %v1708_v8 = vld [vmem:[#allocation10 + $0x450] sm:$0xff] }
 0x238   :  { %3683 = vmatprep.subr.bf16.mxu1 %v3682_v9  ;;  %v1520_v9 = vld [vmem:[#allocation3 + $0xe] sm:$0xff]  ;;  %v3712_v13 = vpack.c.bf16 %v1708_v8, %v1706_v7 }
 0x23a   :  { %1473 = vmatmul.mubr.f32.gmra.mrb[6].mxu1 %v1352_v22 }
 0x23b   :  { %3685 = vmatpush1.bf16.msra.mxu1 %v3684_v15  ;;  %1478 = vmatprep.mubr.f32.mxu1 %v4598_v25  ;;  %v1712_v15 = vld [vmem:[#allocation10 + $0x470] sm:$0xff] }
 0x23c   :  { %3687 = vmatprep.subr.bf16.mxu1 %v3686_v18  ;;  %v1521_v18 = vld [vmem:[#allocation3 + $0x16] sm:$0xff]  ;;  %v3716_v22 = vpack.c.bf16 %v1712_v15, %v1710_v14 }
 0x23e   :  { %1479 = vmatmul.mubr.f32.gmra.mrb[8].mxu1 %v1353_v0 }
 0x23f   :  { %3689 = vmatpush1.bf16.msra.mxu1 %v3688_v26  ;;  %1484 = vmatprep.mubr.f32.mxu1 %v4598_v25  ;;  %v1716_v26 = vld [vmem:[#allocation10 + $0x490] sm:$0xff] }
 0x240   :  { %3691 = vmatprep.subr.bf16.mxu1 %v3690_v27  ;;  %v1522_v27 = vld [vmem:[#allocation3 + $0x1e] sm:$0xff]  ;;  %v3720_v0 = vpack.c.bf16 %v1716_v26, %v1714_v24 }
 0x242   :  { %1485 = vmatmul.mubr.f32.gmra.mrb[10].mxu1 %v1354_v43 }
 0x243   :  { %3693 = vmatpush1.bf16.msra.mxu1 %v3692_v33  ;;  %1490 = vmatprep.mubr.f32.mxu1 %v4598_v25  ;;  %v1720_v33 = vld [vmem:[#allocation10 + $0x4b0] sm:$0xff] }
 0x244   :  { %3695 = vmatprep.subr.bf16.mxu1 %v3694_v37  ;;  %v1523_v37 = vld [vmem:[#allocation3 + $0x26] sm:$0xff]  ;;  %v3724_v43 = vpack.c.bf16 %v1720_v33, %v1718_v32 }
 0x246   :  { %1491 = vmatmul.mubr.f32.gmra.mrb[12].mxu1 %v1355_v51 }
 0x247   :  { %3697 = vmatpush1.bf16.msra.mxu1 %v3696_v46  ;;  %1496 = vmatprep.mubr.f32.mxu1 %v4598_v25  ;;  %v1724_v46 = vld [vmem:[#allocation10 + $0x4d0] sm:$0xff] }
 0x248   :  { %3699 = vmatprep.subr.bf16.mxu1 %v3698_v47  ;;  %v1524_v47 = vld [vmem:[#allocation3 + $0x2e] sm:$0xff]  ;;  %v3728_v51 = vpack.c.bf16 %v1724_v46, %v1722_v45 }
 0x24a   :  { %1497 = vmatmul.mubr.f32.gmra.mrb[14].mxu1 %v1356_v57  ;;  %v2115_v57 = vld [vmem:[#allocation11 + $0xa0] sm:$0xff] }
 0x24b   :  { %3701 = vmatpush1.bf16.msra.mxu1 %v3700_v54  ;;  %1624 = vmatprep.mubr.f32.mxu1 %v4598_v25  ;;  %v1728_v54 = vld [vmem:[#allocation10 + $0x4f0] sm:$0xff]  ;;  %v3765_v40 = vpack.c.bf16 %v2116_v58, %v2115_v57 }
 0x24c   :  { %3703 = vmatprep.subr.bf16.mxu1 %v3702_v55  ;;  %v1525_v55 = vld [vmem:[#allocation3 + $0x36] sm:$0xff]  ;;  %v3732_v39 = vpack.c.bf16 %v1728_v54, %v1726_v53 }
 0x24e   :  { %1625 = vmatmul.mubr.f32.vlgmr.msra.gmra.mrb[0].mxu1 %v1519_v1  ;;  %v4655_v1 = vrot.slane %v1859_v63, %v962_v36 }
 0x24f   :  { %3705 = vmatpush1.bf16.msra.mxu1 %v3704_v60  ;;  %1630 = vmatprep.mubr.f32.mxu1 %v4598_v25  ;;  %v2117_v60 = vld [vmem:[#allocation11 + $0xb0] sm:$0xff] }
 0x250   :  { %3707 = vmatprep.subr.bf16.mxu1 %v3706_v61  ;;  %v2118_v61 = vld [vmem:[#allocation11 + $0xb8] sm:$0xff] }
 0x251   :  { %v3768_v62 = vpack.c.bf16 %v2118_v61, %v2117_v60 }
 0x252   :  { %1631 = vmatmul.mubr.f32.gmra.mrb[2].mxu1 %v1520_v9 }
 0x253   :  { %3709 = vmatpush1.bf16.msra.mxu1 %v3708_v4  ;;  %1636 = vmatprep.mubr.f32.mxu1 %v4598_v25 }
 0x254   :  { %3711 = vmatprep.subr.bf16.mxu1 %v3710_v6 }
 0x256   :  { %1637 = vmatmul.mubr.f32.gmra.mrb[4].mxu1 %v1521_v18 }
 0x257   :  { %3713 = vmatpush1.bf16.msra.mxu1 %v3712_v13  ;;  %1642 = vmatprep.mubr.f32.mxu1 %v4598_v25 }
 0x258   :  { %3715 = vmatprep.subr.bf16.mxu1 %v3714_v12 }
 0x25a   :  { %1643 = vmatmul.mubr.f32.gmra.mrb[6].mxu1 %v1522_v27 }
 0x25b   :  { %3717 = vmatpush1.bf16.msra.mxu1 %v3716_v22  ;;  %1648 = vmatprep.mubr.f32.mxu1 %v4598_v25 }
 0x25c   :  { %3719 = vmatprep.subr.bf16.mxu1 %v3718_v23 }
 0x25e   :  { %1649 = vmatmul.mubr.f32.gmra.mrb[8].mxu1 %v1523_v37 }
 0x25f   :  { %3721 = vmatpush1.bf16.msra.mxu1 %v3720_v0  ;;  %1654 = vmatprep.mubr.f32.mxu1 %v4598_v25 }
 0x260   :  { %3723 = vmatprep.subr.bf16.mxu1 %v3722_v31 }
 0x262   :  { %1655 = vmatmul.mubr.f32.gmra.mrb[10].mxu1 %v1524_v47 }
 0x263   :  { %3725 = vmatpush1.bf16.msra.mxu1 %v3724_v43  ;;  %1660 = vmatprep.mubr.f32.mxu1 %v4598_v25 }
 0x264   :  { %3727 = vmatprep.subr.bf16.mxu1 %v3726_v44 }
 0x266   :  { %1661 = vmatmul.mubr.f32.gmra.mrb[12].mxu1 %v1525_v55 }
 0x267   :  { %3729 = vmatpush1.bf16.msra.mxu1 %v3728_v51  ;;  %1666 = vmatprep.mubr.f32.mxu1 %v4598_v25 }
 0x268   :  { %3731 = vmatprep.subr.bf16.mxu1 %v3730_v52 }
 0x26a   :  { %1667 = vmatmul.mubr.f32.gmra.mrb[14].mxu1 %v1526_v56 }
 0x26b   :  { %3733 = vmatpush1.bf16.msra.mxu1 %v3732_v39  ;;  %1794 = vmatprep.mubr.f32.mxu1 %v4598_v25 }
 0x26e   :  { %1795 = vmatmul.mubr.f32.vlgmr.msra.gmra.mrb[0].mxu1 %v4558_v21  ;;  %v4281_v21 = vmov 0.0|0.0  }
 0x26f   :  { %1800 = vmatprep.mubr.f32.mxu1 %v4598_v25  ;;  %3734 = vmatprep.subr.bf16.mxu0 %v4281_v21 }
 0x270   :  { %3758 = vmatprep.subr.bf16.mxu1 %v4281_v21 }
 0x272   :  { %1801 = vmatmul.mubr.f32.gmra.mrb[2].mxu1 %v4563_v30  ;;  %v2111_v30 = vld [vmem:[#allocation11 + $0x80] sm:$0xff] }
 0x273   :  { %1806 = vmatprep.mubr.f32.mxu1 %v4598_v25 }
 0x276   :  { %1807 = vmatmul.mubr.f32.gmra.mrb[4].mxu1 %v4568_v50  ;;  %v2112_v50 = vld [vmem:[#allocation11 + $0x88] sm:$0xff] }
 0x277   :  { %1812 = vmatprep.mubr.f32.mxu1 %v4598_v25 }
 0x27a   :  { %1813 = vmatmul.mubr.f32.gmra.mrb[6].mxu1 %v4572_v59  ;;  %v3759_v59 = vpack.c.bf16 %v2112_v50, %v2111_v30 }
 0x27b   :  { %1818 = vmatprep.mubr.f32.mxu1 %v4598_v25 }
 0x27c   :  { %3760 = vmatpush3.bf16.msra.mxu1 %v3759_v59 }
 0x27d   :  { %3761 = vmatprep.subr.bf16.mxu1 %v4281_v21 }
 0x27e   :  { %1819 = vmatmul.mubr.f32.gmra.mrb[8].mxu1 %v4576_v5  ;;  %v2113_v5 = vld [vmem:[#allocation11 + $0x90] sm:$0xff] }
 0x27f   :  { %1824 = vmatprep.mubr.f32.mxu1 %v4598_v25 }
 0x282   :  { %1825 = vmatmul.mubr.f32.gmra.mrb[10].mxu1 %v4580_v16  ;;  %v2114_v16 = vld [vmem:[#allocation11 + $0x98] sm:$0xff] }
 0x283   :  { %1830 = vmatprep.mubr.f32.mxu1 %v4598_v25 }
 0x286   :  { %1831 = vmatmul.mubr.f32.gmra.mrb[12].mxu1 %v4582_v17  ;;  %v3762_v17 = vpack.c.bf16 %v2114_v16, %v2113_v5 }
 0x287   :  { %1836 = vmatprep.mubr.f32.mxu1 %v4598_v25 }
 0x288   :  { %3763 = vmatpush3.bf16.msra.mxu1 %v3762_v17 }
 0x289   :  { %3764 = vmatprep.subr.bf16.mxu1 %v4281_v21 }
 0x28a   :  { %1837 = vmatmul.mubr.f32.gmra.mrb[14].mxu1 %v4598_v25 }
 0x28b   :  { %3264 = vmatprep.mubr.msk.f32.mxu1 %vm4282_vm1, %v4598_v25 }
 0x28c   :  { %3766 = vmatpush3.bf16.msra.mxu1 %v3765_v40 }
 0x28d   :  { %3767 = vmatprep.subr.bf16.mxu1 %v4281_v21 }
 0x290   :  { %3769 = vmatpush3.bf16.msra.mxu1 %v3768_v62 }
 0x291   :  { %3770 = vmatprep.subr.bf16.mxu1 %v4281_v21 }
 0x341   :  { %v1796_v3 = vpop.f32.mrb[0].mxu1 }
 0x342   :  { %v1871_v4 = vadd.f32 %v4655_v1, %v1796_v3  ;;  %v1798_v6 = vpop.f32.mrb[1].mxu1 }
 0x343   :  { %v1872_v7 = vadd.f32 %v4659_v2, %v1798_v6 }
 0x344   :  { %v1887_v8 = vmax.f32 %v1871_v4, 0.0 }
 0x345   :  { %v1888_v9 = vmax.f32 %v1872_v7, 0.0  ;;  %v1802_v10 = vpop.f32.mrb[2].mxu1 }
 0x346   :  { %v1873_v11 = vadd.f32 %v4655_v1, %v1802_v10  ;;  %v1804_v13 = vpop.f32.mrb[3].mxu1 }
 0x347   :  { %v1903_v12 = vmax.f32 %v1887_v8, %v1888_v9  ;;  %v1874_v36 = vadd.f32 %v4659_v2, %v1804_v13 }
 0x348   :  { %v1889_v14 = vmax.f32 %v1873_v11, 0.0 }
 0x349   :  { %1911 = vst [vmem:[#allocation4] sm:$0xff] %v1903_v12  ;;  %v1890_v15 = vmax.f32 %v1874_v36, 0.0  ;;  %v1808_v38 = vpop.f32.mrb[4].mxu1 }
 0x34a   :  { %v1875_v18 = vadd.f32 %v4655_v1, %v1808_v38  ;;  %v1810_v19 = vpop.f32.mrb[5].mxu1 }
 0x34b   :  { %v1904_v20 = vmax.f32 %v1889_v14, %v1890_v15  ;;  %v1876_v22 = vadd.f32 %v4659_v2, %v1810_v19  ;;  %v4689_v14 = vmul.u32 32, %v4528_v35 }
 0x34c   :  { %v1891_v23 = vmax.f32 %v1875_v18, 0.0 }
 0x34d   :  { %1912 = vst [vmem:[#allocation4 + $0x8] sm:$0xff] %v1904_v20  ;;  %v1892_v24 = vmax.f32 %v1876_v22, 0.0  ;;  %v1814_v26 = vpop.f32.mrb[6].mxu1  ;;  %v2033_v35 = vadd.s32 4, %v4689_v14 }
 0x34e   :  { %v1877_v27 = vadd.f32 %v4655_v1, %v1814_v26  ;;  %v1816_v28 = vpop.f32.mrb[7].mxu1 }
 0x34f   :  { %v1905_v29 = vmax.f32 %v1891_v23, %v1892_v24  ;;  %v1878_v0 = vadd.f32 %v4659_v2, %v1816_v28  ;;  %v2017_v23 = vld [vmem:[#allocation11] sm:$0xff]  ;;  %v2018_v24 = vld [vmem:[#allocation11 + $0x8] sm:$0xff]  ;;  %v2019_v28 = vld [vmem:[#allocation11 + $0x10] sm:$0xff] }
 0x350   :  { %v1893_v31 = vmax.f32 %v1877_v27, 0.0  ;;  %v3783_v27 = vpack.c.bf16 %v2018_v24, %v2017_v23  ;;  %v2510_v23 = vld [vmem:[#allocation11 + $0x180] sm:$0xff]  ;;  %v2511_v24 = vld [vmem:[#allocation11 + $0x188] sm:$0xff] }
 0x351   :  { %1913 = vst [vmem:[#allocation4 + $0x10] sm:$0xff] %v1905_v29  ;;  %v1894_v32 = vmax.f32 %v1878_v0, 0.0  ;;  %v1820_v33 = vpop.f32.mrb[8].mxu1 }
 0x352   :  { %v1879_v37 = vadd.f32 %v4655_v1, %v1820_v33  ;;  %v1822_v41 = vpop.f32.mrb[9].mxu1 }
 0x353   :  { %v1906_v42 = vmax.f32 %v1893_v31, %v1894_v32  ;;  %v1880_v43 = vadd.f32 %v4659_v2, %v1822_v41  ;;  %v2021_v31 = vld [vmem:[#allocation11 + $0x20] sm:$0xff]  ;;  %v2022_v32 = vld [vmem:[#allocation11 + $0x28] sm:$0xff]  ;;  %v2024_v41 = vld [vmem:[#allocation11 + $0x38] sm:$0xff] }
 0x354   :  { %v1895_v44 = vmax.f32 %v1879_v37, 0.0  ;;  %v1919_v49 = vld [vmem:[#allocation4 + $0x2] sm:$0xff]  ;;  %v3789_v33 = vpack.c.bf16 %v2022_v32, %v2021_v31  ;;  %v2023_v37 = vld [vmem:[#allocation11 + $0x30] sm:$0xff] }
 0x355   :  { %1914 = vst [vmem:[#allocation4 + $0x18] sm:$0xff] %v1906_v42  ;;  %v1896_v45 = vmax.f32 %v1880_v43, 0.0  ;;  %v1826_v46 = vpop.f32.mrb[10].mxu1  ;;  %v1927_v56 = vmax.f32 %v1903_v12, %v1919_v49  ;;  %v2025_v43 = vld [vmem:[#allocation11 + $0x40] sm:$0xff]  ;;  %v2512_v31 = vld [vmem:[#allocation11 + $0x190] sm:$0xff]  ;;  %v2513_v32 = vld [vmem:[#allocation11 + $0x198] sm:$0xff] }
 0x356   :  { %v1881_v47 = vadd.f32 %v4655_v1, %v1826_v46  ;;  %v1828_v48 = vpop.f32.mrb[11].mxu1  ;;  %v2027_v46 = vld [vmem:[#allocation11 + $0x50] sm:$0xff]  ;;  %v2029_v49 = vld [vmem:[#allocation11 + $0x60] sm:$0xff] }
 0x357   :  { %v1907_v51 = vmax.f32 %v1895_v44, %v1896_v45  ;;  %v1882_v52 = vadd.f32 %v4659_v2, %v1828_v48  ;;  %v2026_v44 = vld [vmem:[#allocation11 + $0x48] sm:$0xff] }
 0x358   :  { %v1897_v53 = vmax.f32 %v1881_v47, 0.0  ;;  %v1920_v54 = vld [vmem:[#allocation4 + $0xa] sm:$0xff]  ;;  %v3795_v45 = vpack.c.bf16 %v2026_v44, %v2025_v43  ;;  %v2028_v47 = vld [vmem:[#allocation11 + $0x58] sm:$0xff] }
 0x359   :  { %1915 = vst [vmem:[#allocation4 + $0x20] sm:$0xff] %v1907_v51  ;;  %v1898_v55 = vmax.f32 %v1882_v52, 0.0  ;;  %v1832_v39 = vpop.f32.mrb[12].mxu1  ;;  %v1928_v30 = vmax.f32 %v1904_v20, %v1920_v54  ;;  %v3798_v48 = vpack.c.bf16 %v2028_v47, %v2027_v46  ;;  %v2032_v54 = vld [vmem:[#allocation11 + $0x78] sm:$0xff]  ;;  %v2357_v43 = vld [vmem:[#allocation11 + $0x160] sm:$0xff]  ;;  %v2358_v44 = vld [vmem:[#allocation11 + $0x168] sm:$0xff] }
 0x35a   :  { %v1883_v50 = vadd.f32 %v4655_v1, %v1832_v39  ;;  %v1834_v59 = vpop.f32.mrb[13].mxu1  ;;  %v2119_v39 = vld [vmem:[#allocation11 + $0xc0] sm:$0xff]  ;;  %v2515_v47 = vld [vmem:[#allocation11 + $0x1a8] sm:$0xff] }
 0x35b   :  { %v1908_v5 = vmax.f32 %v1897_v53, %v1898_v55  ;;  %v1884_v16 = vadd.f32 %v4659_v2, %v1834_v59  ;;  %v4675_v17 = vpack.c.bf16 %v1928_v30, %v1927_v56  ;;  %v2031_v53 = vld [vmem:[#allocation11 + $0x70] sm:$0xff]  ;;  %v2120_v56 = vld [vmem:[#allocation11 + $0xc8] sm:$0xff]  ;;  %v2122_v59 = vld [vmem:[#allocation11 + $0xd8] sm:$0xff] }
 0x35c   :  { %v1899_v57 = vmax.f32 %v1883_v50, 0.0  ;;  %v1921_v62 = vld [vmem:[#allocation4 + $0x12] sm:$0xff]  ;;  %v3804_v55 = vpack.c.bf16 %v2032_v54, %v2031_v53  ;;  %v3771_v30 = vpack.c.bf16 %v2120_v56, %v2119_v39  ;;  %v2514_v46 = vld [vmem:[#allocation11 + $0x1a0] sm:$0xff] }
 0x35d   :  { %1916 = vst [vmem:[#allocation4 + $0x28] sm:$0xff] %v1908_v5  ;;  %v1900_v58 = vmax.f32 %v1884_v16, 0.0  ;;  %v1838_v40 = vpop.f32.mrb[14].mxu1  ;;  %3736 = vmatpush3.bf16.msra.mxu0 %v4675_v17  ;;  %v1929_v8 = vmax.f32 %v1905_v29, %v1921_v62  ;;  %v2020_v29 = vld [vmem:[#allocation11 + $0x18] sm:$0xff]  ;;  %v2121_v50 = vld [vmem:[#allocation11 + $0xd0] sm:$0xff]  ;;  %v2123_v16 = vld [vmem:[#allocation11 + $0xe0] sm:$0xff] }
 0x35e   :  { %v1885_v60 = vadd.f32 %v4655_v1, %v1838_v40  ;;  %v1840_v61 = vpop.f32.mrb[15].mxu1  ;;  %3737 = vmatprep.subr.bf16.mxu0 %v4281_v21  ;;  %v3786_v0 = vpack.c.bf16 %v2020_v29, %v2019_v28  ;;  %3772 = vmatpush3.bf16.msra.mxu1 %v3771_v30  ;;  %v2125_v40 = vld [vmem:[#allocation11 + $0xf0] sm:$0xff]  ;;  %v3855_v29 = vpack.c.bf16 %v2511_v24, %v2510_v23  ;;  %v2519_v39 = vld [vmem:[#allocation11 + $0x1c8] sm:$0xff] }
 0x35f   :  { %v1909_v63 = vmax.f32 %v1899_v57, %v1900_v58  ;;  %v1886_v3 = vadd.f32 %v4659_v2, %v1840_v61  ;;  %v4686_v2 = vand.u32 127, %v960_v34  ;;  %3773 = vmatprep.subr.bf16.mxu1 %v4281_v21  ;;  %v2124_v57 = vld [vmem:[#allocation11 + $0xe8] sm:$0xff]  ;;  %v2520_v30 = vld [vmem:[#allocation11 + $0x1d0] sm:$0xff] }
 0x360   :  { %v1901_v4 = vmax.f32 %v1885_v60, 0.0  ;;  %v1922_v6 = vld [vmem:[#allocation4 + $0x1a] sm:$0xff]  ;;  %v3777_v58 = vpack.c.bf16 %v2124_v57, %v2123_v16  ;;  %v2523_v16 = vld [vmem:[#allocation11 + $0x1e8] sm:$0xff] }
 0x361   :  { %1917 = vst [vmem:[#allocation4 + $0x30] sm:$0xff] %v1909_v63  ;;  %v1902_v7 = vmax.f32 %v1886_v3, 0.0  ;;  %v1930_v9 = vmax.f32 %v1906_v42, %v1922_v6  ;;  %vm1940_vm2 = vcmp.eq.s32.totalorder %v4686_v2, %v4689_v14  ;;  %vm2034_vm4 = vcmp.eq.s32.totalorder %v4686_v2, %v2033_v35  ;;  %v2126_v60 = vld [vmem:[#allocation11 + $0xf8] sm:$0xff]  ;;  %v2346_v6 = vld [vmem:[#allocation11 + $0x108] sm:$0xff]  ;;  %v2685_v24 = vld [vmem:[#allocation11 + $0x250] sm:$0xff] }
 0x362   :  { %v3017_v34 = vsel %vm1940_vm2, 1.0, %v4598_v25  ;;  %v3019_v26 = vsel %vm2034_vm4, 1.0, %v4598_v25  ;;  %v3792_v42 = vpack.c.bf16 %v2024_v41, %v2023_v37  ;;  %v3780_v61 = vpack.c.bf16 %v2126_v60, %v2125_v40  ;;  %v2356_v37 = vld [vmem:[#allocation11 + $0x158] sm:$0xff] }
 0x363   :  { %v1910_v10 = vmax.f32 %v1901_v4, %v1902_v7  ;;  %v4681_v11 = vpack.c.bf16 %v1930_v9, %v1929_v8  ;;  %v2267_v3 = vadd.s32 8, %v4689_v14  ;;  %v2345_v4 = vld [vmem:[#allocation11 + $0x100] sm:$0xff]  ;;  %v3858_v41 = vpack.c.bf16 %v2513_v32, %v2512_v31  ;;  %v2525_v40 = vld [vmem:[#allocation11 + $0x1f8] sm:$0xff]  ;;  %v2689_v31 = vld [vmem:[#allocation11 + $0x270] sm:$0xff] }
 0x364   :  { %v1923_v1 = vld [vmem:[#allocation4 + $0x22] sm:$0xff]  ;;  %v3819_v8 = vpack.c.bf16 %v2346_v6, %v2345_v4 }
 0x365   :  { %1918 = vst [vmem:[#allocation4 + $0x38] sm:$0xff] %v1910_v10  ;;  %3739 = vmatpush3.bf16.msra.mxu0 %v4681_v11  ;;  %v1931_v12 = vmax.f32 %v1907_v51, %v1923_v1  ;;  %v2030_v51 = vld [vmem:[#allocation11 + $0x68] sm:$0xff]  ;;  %vm2268_vm5 = vcmp.eq.s32.totalorder %v4686_v2, %v2267_v3  ;;  %v2348_v1 = vld [vmem:[#allocation11 + $0x118] sm:$0xff] }
 0x366   :  { %3740 = vmatprep.subr.bf16.mxu0 %v4281_v21  ;;  %v3801_v52 = vpack.c.bf16 %v2030_v51, %v2029_v49  ;;  %v3021_v7 = vsel %vm2268_vm5, 1.0, %v4598_v25  ;;  %v3861_v49 = vpack.c.bf16 %v2515_v47, %v2514_v46  ;;  %v2516_v51 = vld [vmem:[#allocation11 + $0x1b0] sm:$0xff]  ;;  %v2690_v32 = vld [vmem:[#allocation11 + $0x278] sm:$0xff]  ;;  %v2775_v46 = vld [vmem:[#allocation13 + $0x20] sm:$0xff] }
 0x367   :  { %v2776_v47 = vld [vmem:[#allocation13 + $0x28] sm:$0xff] }
 0x368   :  { %v1924_v13 = vld [vmem:[#allocation4 + $0x2a] sm:$0xff] }
 0x369   :  { %v1932_v36 = vmax.f32 %v1908_v5, %v1924_v13  ;;  %v3774_v5 = vpack.c.bf16 %v2122_v59, %v2121_v50  ;;  %v2521_v50 = vld [vmem:[#allocation11 + $0x1d8] sm:$0xff] }
 0x36a   :  { %v3870_v59 = vpack.c.bf16 %v2521_v50, %v2520_v30 }
 0x36b   :  { %v4691_v15 = vpack.c.bf16 %v1932_v36, %v1931_v12  ;;  %3775 = vmatpush3.bf16.msra.mxu1 %v3774_v5  ;;  %v2349_v36 = vld [vmem:[#allocation11 + $0x120] sm:$0xff] }
 0x36c   :  { %v1925_v38 = vld [vmem:[#allocation4 + $0x32] sm:$0xff]  ;;  %v1926_v18 = vld [vmem:[#allocation4 + $0x3a] sm:$0xff]  ;;  %3776 = vmatprep.subr.bf16.mxu1 %v4281_v21  ;;  %v2522_v5 = vld [vmem:[#allocation11 + $0x1e0] sm:$0xff] }
 0x36d   :  { %v1933_v19 = vmax.f32 %v1909_v63, %v1925_v38  ;;  %v1934_v20 = vmax.f32 %v1910_v10, %v1926_v18  ;;  %3742 = vmatpush3.bf16.msra.mxu0 %v4691_v15  ;;  %v2347_v10 = vld [vmem:[#allocation11 + $0x110] sm:$0xff]  ;;  %v2350_v38 = vld [vmem:[#allocation11 + $0x128] sm:$0xff]  ;;  %v2432_v18 = vadd.s32 12, %v4689_v14  ;;  %v3873_v57 = vpack.c.bf16 %v2523_v16, %v2522_v5 }
 0x36e   :  { %3743 = vmatprep.subr.bf16.mxu0 %v4281_v21  ;;  %v3822_v12 = vpack.c.bf16 %v2348_v1, %v2347_v10  ;;  %v2676_v10 = vld [vmem:[#allocation11 + $0x208] sm:$0xff] }
 0x36f   :  { %v4697_v22 = vpack.c.bf16 %v1934_v20, %v1933_v19  ;;  %3778 = vmatpush3.bf16.msra.mxu1 %v3777_v58  ;;  %v3825_v19 = vpack.c.bf16 %v2350_v38, %v2349_v36  ;;  %v2351_v20 = vld [vmem:[#allocation11 + $0x130] sm:$0xff]  ;;  %vm2433_vm6 = vcmp.eq.s32.totalorder %v4686_v2, %v2432_v18 }
 0x370   :  { %3779 = vmatprep.subr.bf16.mxu1 %v4281_v21  ;;  %v3023_v28 = vsel %vm2433_vm6, 1.0, %v4598_v25  ;;  %v2524_v58 = vld [vmem:[#allocation11 + $0x1f0] sm:$0xff] }
 0x371   :  { %3745 = vmatpush3.bf16.msra.mxu0 %v4697_v22  ;;  %v3876_v60 = vpack.c.bf16 %v2525_v40, %v2524_v58  ;;  %v2681_v18 = vld [vmem:[#allocation11 + $0x230] sm:$0xff] }
 0x372   :  { %3746 = vmatprep.subr.bf16.mxu0 %v4281_v21 }
 0x373   :  { %3781 = vmatpush3.bf16.msra.mxu1 %v3780_v61 }
 0x374   :  { %3211 = vmatmul.mubr.msk.f32.vlgmr.msra.gmra.mrb[16].mxu0 %vm1943_vm3, %v3017_v34  ;;  %3818 = vmatprep.subr.bf16.mxu1 %v4281_v21  ;;  %v2352_v34 = vld [vmem:[#allocation11 + $0x138] sm:$0xff] }
 0x375   :  { %3748 = vmatpush3.bf16.msra.mxu0 %v4675_v17  ;;  %3229 = vmatprep.mubr.msk.f32.mxu0 %vm4282_vm1, %v4598_v25  ;;  %v3828_v35 = vpack.c.bf16 %v2352_v34, %v2351_v20  ;;  %v2683_v34 = vld [vmem:[#allocation11 + $0x240] sm:$0xff] }
 0x376   :  { %3749 = vmatprep.subr.bf16.mxu0 %v4281_v21 }
 0x379   :  { %3751 = vmatpush3.bf16.msra.mxu0 %v4681_v11 }
 0x37a   :  { %3752 = vmatprep.subr.bf16.mxu0 %v4281_v21 }
 0x37d   :  { %3754 = vmatpush3.bf16.msra.mxu0 %v4691_v15 }
 0x37e   :  { %3755 = vmatprep.subr.bf16.mxu0 %v4281_v21 }
 0x381   :  { %3757 = vmatpush3.bf16.msra.mxu0 %v4697_v22 }
 0x382   :  { %3782 = vmatprep.subr.bf16.mxu0 %v4281_v21 }
 0x384   :  { %3230 = vmatmul.mubr.msk.f32.vlgmr.msra.gmra.mrb[18].mxu0 %vm1943_vm3, %v3019_v26  ;;  %v2353_v26 = vld [vmem:[#allocation11 + $0x140] sm:$0xff] }
 0x385   :  { %3784 = vmatpush3.bf16.msra.mxu0 %v3783_v27  ;;  %3299 = vmatprep.mubr.msk.f32.mxu0 %vm4282_vm1, %v4598_v25  ;;  %v2354_v27 = vld [vmem:[#allocation11 + $0x148] sm:$0xff] }
 0x386   :  { %3785 = vmatprep.subr.bf16.mxu0 %v4281_v21 }
 0x389   :  { %3787 = vmatpush3.bf16.msra.mxu0 %v3786_v0  ;;  %v3831_v0 = vpack.c.bf16 %v2354_v27, %v2353_v26  ;;  %v2686_v26 = vld [vmem:[#allocation11 + $0x258] sm:$0xff] }
 0x38a   :  { %3788 = vmatprep.subr.bf16.mxu0 %v4281_v21  ;;  %v3906_v27 = vpack.c.bf16 %v2686_v26, %v2685_v24  ;;  %v3027_v24 = vld [vmem:[%s4853_s6] ss:$0 sm:$0xff] }
 0x38d   :  { %3790 = vmatpush3.bf16.msra.mxu0 %v3789_v33  ;;  %v2355_v33 = vld [vmem:[#allocation11 + $0x150] sm:$0xff] }
 0x38e   :  { %3791 = vmatprep.subr.bf16.mxu0 %v4281_v21 }
 0x391   :  { %3793 = vmatpush3.bf16.msra.mxu0 %v3792_v42  ;;  %v3834_v42 = vpack.c.bf16 %v2356_v37, %v2355_v33  ;;  %v3912_v33 = vpack.c.bf16 %v2690_v32, %v2689_v31  ;;  %v2771_v37 = vld [vmem:[#allocation13] sm:$0xff]  ;;  %v2880_v31 = vld [vmem:[#allocation14 + $0x78] sm:$0xff] }
 0x392   :  { %3794 = vmatprep.subr.bf16.mxu0 %v4281_v21 }
 0x395   :  { %3796 = vmatpush3.bf16.msra.mxu0 %v3795_v45  ;;  %v3837_v45 = vpack.c.bf16 %v2358_v44, %v2357_v43  ;;  %v2774_v44 = vld [vmem:[#allocation13 + $0x18] sm:$0xff] }
 0x396   :  { %3797 = vmatprep.subr.bf16.mxu0 %v4281_v21 }
 0x399   :  { %3799 = vmatpush3.bf16.msra.mxu0 %v3798_v48  ;;  %v2359_v48 = vld [vmem:[#allocation11 + $0x170] sm:$0xff] }
 0x39a   :  { %3800 = vmatprep.subr.bf16.mxu0 %v4281_v21 }
 0x39d   :  { %3802 = vmatpush3.bf16.msra.mxu0 %v3801_v52  ;;  %v2517_v52 = vld [vmem:[#allocation11 + $0x1b8] sm:$0xff] }
 0x39e   :  { %3803 = vmatprep.subr.bf16.mxu0 %v4281_v21  ;;  %v3864_v54 = vpack.c.bf16 %v2517_v52, %v2516_v51  ;;  %v2779_v52 = vld [vmem:[#allocation13 + $0x40] sm:$0xff] }
 0x3a1   :  { %3805 = vmatpush3.bf16.msra.mxu0 %v3804_v55  ;;  %v2518_v55 = vld [vmem:[#allocation11 + $0x1c0] sm:$0xff] }
 0x3a2   :  { %3806 = vmatprep.subr.bf16.mxu0 %v4281_v21  ;;  %v3867_v56 = vpack.c.bf16 %v2519_v39, %v2518_v55  ;;  %v2781_v55 = vld [vmem:[#allocation13 + $0x50] sm:$0xff]  ;;  %v2782_v39 = vld [vmem:[#allocation13 + $0x58] sm:$0xff] }
 0x447   :  { %v2013_v62 = vpop.f32.mrb[16].mxu0 }
 0x448   :  { %3300 = vmatmul.mubr.f32.vlgmr.msra.gmra.mrb[20].mxu0 %v2013_v62  ;;  %v3212_v63 = vpop.f32.mrb[17].mxu0 }
 0x449   :  { %3808 = vmatpush3.bf16.msra.mxu0 %v4675_v17  ;;  %3318 = vmatprep.mubr.msk.f32.mxu0 %vm4282_vm1, %v4598_v25 }
 0x44a   :  { %3809 = vmatprep.subr.bf16.mxu0 %v4281_v21 }
 0x44d   :  { %3811 = vmatpush3.bf16.msra.mxu0 %v4681_v11 }
 0x44e   :  { %3812 = vmatprep.subr.bf16.mxu0 %v4281_v21 }
 0x451   :  { %3814 = vmatpush3.bf16.msra.mxu0 %v4691_v15 }
 0x452   :  { %3815 = vmatprep.subr.bf16.mxu0 %v4281_v21 }
 0x455   :  { %3817 = vmatpush3.bf16.msra.mxu0 %v4697_v22 }
 0x456   :  { %3842 = vmatprep.subr.bf16.mxu0 %v4281_v21 }
 0x457   :  { %v2106_v9 = vpop.f32.mrb[18].mxu0 }
 0x458   :  { %3319 = vmatmul.mubr.msk.f32.vlgmr.msra.gmra.mrb[22].mxu0 %vm1943_vm3, %v3021_v7  ;;  %3265 = vmatmul.mubr.f32.vlgmr.msra.gmra.mrb[16].mxu1 %v2106_v9  ;;  %v3231_v13 = vpop.f32.mrb[19].mxu0  ;;  %v2597_v9 = vadd.s32 16, %v4689_v14 }
 0x459   :  { %3844 = vmatpush3.bf16.msra.mxu0 %v4675_v17  ;;  %3372 = vmatprep.mubr.msk.f32.mxu0 %vm4282_vm1, %v4598_v25 }
 0x45a   :  { %3845 = vmatprep.subr.bf16.mxu0 %v4281_v21  ;;  %3820 = vmatpush3.bf16.msra.mxu1 %v3819_v8  ;;  %v4782_v8 = vld [vmem:[#allocation3 + $0x40] sm:$0xff]  ;;  %vm2598_vm7 = vcmp.eq.s32.totalorder %v4686_v2, %v2597_v9  ;;  %v2679_v2 = vld [vmem:[#allocation11 + $0x220] sm:$0xff] }
 0x45b   :  { %3821 = vmatprep.subr.bf16.mxu1 %v4281_v21  ;;  %3353 = vmatprep.mubr.msk.f32.mxu1 %vm4282_vm1, %v4598_v25  ;;  %v3025_v1 = vsel %vm2598_vm7, 1.0, %v4782_v8  ;;  %v2867_v9 = vld [vmem:[#allocation14 + $0x10] sm:$0xff] }
 0x45d   :  { %3847 = vmatpush3.bf16.msra.mxu0 %v4681_v11 }
 0x45e   :  { %3848 = vmatprep.subr.bf16.mxu0 %v4281_v21  ;;  %3823 = vmatpush3.bf16.msra.mxu1 %v3822_v12  ;;  %v2678_v12 = vld [vmem:[#allocation11 + $0x218] sm:$0xff] }
 0x45f   :  { %3824 = vmatprep.subr.bf16.mxu1 %v4281_v21 }
 0x461   :  { %3850 = vmatpush3.bf16.msra.mxu0 %v4691_v15 }
 0x462   :  { %3851 = vmatprep.subr.bf16.mxu0 %v4281_v21  ;;  %3826 = vmatpush3.bf16.msra.mxu1 %v3825_v19  ;;  %v2682_v19 = vld [vmem:[#allocation11 + $0x238] sm:$0xff] }
 0x463   :  { %3827 = vmatprep.subr.bf16.mxu1 %v4281_v21  ;;  %v3900_v20 = vpack.c.bf16 %v2682_v19, %v2681_v18  ;;  %v2876_v18 = vld [vmem:[#allocation14 + $0x58] sm:$0xff] }
 0x465   :  { %3853 = vmatpush3.bf16.msra.mxu0 %v4697_v22 }
 0x466   :  { %3829 = vmatpush3.bf16.msra.mxu1 %v3828_v35  ;;  %3854 = vmatprep.subr.bf16.mxu0 %v4281_v21  ;;  %v2684_v35 = vld [vmem:[#allocation11 + $0x248] sm:$0xff] }
 0x467   :  { %3830 = vmatprep.subr.bf16.mxu1 %v4281_v21  ;;  %v3903_v23 = vpack.c.bf16 %v2684_v35, %v2683_v34  ;;  %v2878_v34 = vld [vmem:[#allocation14 + $0x68] sm:$0xff] }
 0x468   :  { %3373 = vmatmul.mubr.msk.f32.vlgmr.msra.gmra.mrb[24].mxu0 %vm1943_vm3, %v3023_v28  ;;  %v2687_v28 = vld [vmem:[#allocation11 + $0x260] sm:$0xff] }
 0x469   :  { %3856 = vmatpush3.bf16.msra.mxu0 %v3855_v29  ;;  %3407 = vmatprep.mubr.msk.f32.mxu0 %vm4282_vm1, %v4598_v25  ;;  %v2360_v25 = vld [vmem:[#allocation11 + $0x178] sm:$0xff]  ;;  %v2688_v29 = vld [vmem:[#allocation11 + $0x268] sm:$0xff] }
 0x46a   :  { %3832 = vmatpush3.bf16.msra.mxu1 %v3831_v0  ;;  %3857 = vmatprep.subr.bf16.mxu0 %v4281_v21  ;;  %v3840_v53 = vpack.c.bf16 %v2360_v25, %v2359_v48  ;;  %v3909_v0 = vpack.c.bf16 %v2688_v29, %v2687_v28  ;;  %v3921_v48 = vpack.c.bf16 %v2776_v47, %v2775_v46  ;;  %v2778_v25 = vld [vmem:[#allocation13 + $0x38] sm:$0xff] }
 0x46b   :  { %3833 = vmatprep.subr.bf16.mxu1 %v4281_v21 }
 0x46d   :  { %3859 = vmatpush3.bf16.msra.mxu0 %v3858_v41  ;;  %v2772_v41 = vld [vmem:[#allocation13 + $0x8] sm:$0xff] }
 0x46e   :  { %3835 = vmatpush3.bf16.msra.mxu1 %v3834_v42  ;;  %3860 = vmatprep.subr.bf16.mxu0 %v4281_v21  ;;  %v2773_v42 = vld [vmem:[#allocation13 + $0x10] sm:$0xff]  ;;  %v3915_v43 = vpack.c.bf16 %v2772_v41, %v2771_v37 }
 0x46f   :  { %3836 = vmatprep.subr.bf16.mxu1 %v4281_v21 }
 0x471   :  { %3862 = vmatpush3.bf16.msra.mxu0 %v3861_v49  ;;  %v2777_v49 = vld [vmem:[#allocation13 + $0x30] sm:$0xff] }
 0x472   :  { %3838 = vmatpush3.bf16.msra.mxu1 %v3837_v45  ;;  %3863 = vmatprep.subr.bf16.mxu0 %v4281_v21  ;;  %v3918_v45 = vpack.c.bf16 %v2774_v44, %v2773_v42  ;;  %v3924_v51 = vpack.c.bf16 %v2778_v25, %v2777_v49 }
 0x473   :  { %3839 = vmatprep.subr.bf16.mxu1 %v4281_v21 }
 0x475   :  { %3865 = vmatpush3.bf16.msra.mxu0 %v3864_v54 }
 0x476   :  { %3841 = vmatpush3.bf16.msra.mxu1 %v3840_v53  ;;  %3866 = vmatprep.subr.bf16.mxu0 %v4281_v21  ;;  %v2780_v53 = vld [vmem:[#allocation13 + $0x48] sm:$0xff] }
 0x477   :  { %3878 = vmatprep.subr.bf16.mxu1 %v4281_v21  ;;  %v3927_v54 = vpack.c.bf16 %v2780_v53, %v2779_v52 }
 0x479   :  { %3868 = vmatpush3.bf16.msra.mxu0 %v3867_v56  ;;  %v3930_v56 = vpack.c.bf16 %v2782_v39, %v2781_v55 }
 0x47a   :  { %3869 = vmatprep.subr.bf16.mxu0 %v4281_v21 }
 0x47d   :  { %3871 = vmatpush3.bf16.msra.mxu0 %v3870_v59 }
 0x47e   :  { %3872 = vmatprep.subr.bf16.mxu0 %v4281_v21 }
 0x481   :  { %3874 = vmatpush3.bf16.msra.mxu0 %v3873_v57 }
 0x482   :  { %3875 = vmatprep.subr.bf16.mxu0 %v4281_v21 }
 0x485   :  { %3877 = vmatpush3.bf16.msra.mxu0 %v3876_v60  ;;  %v2783_v60 = vld [vmem:[#allocation13 + $0x60] sm:$0xff] }
 0x486   :  { %3914 = vmatprep.subr.bf16.mxu0 %v4281_v21 }
 0x51b   :  { %v2263_v61 = vpop.f32.mrb[20].mxu0 }
 0x51c   :  { %v3301_v62 = vpop.f32.mrb[21].mxu0 }
 0x52b   :  { %v2340_v63 = vpop.f32.mrb[22].mxu0  ;;  %v2193_v3 = vpop.f32.mrb[16].mxu1 }
 0x52c   :  { %v4779_v4 = vadd.f32 %v2263_v61, %v2193_v3  ;;  %3354 = vmatmul.mubr.f32.vlgmr.msra.gmra.mrb[18].mxu1 %v2340_v63  ;;  %v3320_v6 = vpop.f32.mrb[23].mxu0  ;;  %v3266_v7 = vpop.f32.mrb[17].mxu1  ;;  %v2784_v61 = vld [vmem:[#allocation13 + $0x68] sm:$0xff]  ;;  %v2785_v63 = vld [vmem:[#allocation13 + $0x70] sm:$0xff]  ;;  %v2786_v3 = vld [vmem:[#allocation13 + $0x78] sm:$0xff] }
 0x52d   :  { %3880 = vmatpush3.bf16.msra.mxu1 %v4675_v17  ;;  %3426 = vmatprep.mubr.msk.f32.mxu1 %vm4282_vm1, %v4782_v8  ;;  %v2675_v17 = vld [vmem:[#allocation11 + $0x200] sm:$0xff]  ;;  %v3933_v62 = vpack.c.bf16 %v2784_v61, %v2783_v60  ;;  %v3936_v6 = vpack.c.bf16 %v2786_v3, %v2785_v63  ;;  %v2866_v7 = vld [vmem:[#allocation14 + $0x8] sm:$0xff] }
 0x52e   :  { %3881 = vmatprep.subr.bf16.mxu1 %v4281_v21  ;;  %v3891_v13 = vpack.c.bf16 %v2676_v10, %v2675_v17  ;;  %v2868_v10 = vld [vmem:[#allocation14 + $0x18] sm:$0xff] }
 0x531   :  { %3883 = vmatpush3.bf16.msra.mxu1 %v4681_v11  ;;  %v2677_v11 = vld [vmem:[#allocation11 + $0x210] sm:$0xff] }
 0x532   :  { %3884 = vmatprep.subr.bf16.mxu1 %v4281_v21 }
 0x535   :  { %3886 = vmatpush3.bf16.msra.mxu1 %v4691_v15  ;;  %v3894_v15 = vpack.c.bf16 %v2678_v12, %v2677_v11  ;;  %v2871_v12 = vld [vmem:[#allocation14 + $0x30] sm:$0xff] }
 0x536   :  { %3887 = vmatprep.subr.bf16.mxu1 %v4281_v21 }
 0x539   :  { %3889 = vmatpush3.bf16.msra.mxu1 %v4697_v22  ;;  %v2680_v22 = vld [vmem:[#allocation11 + $0x228] sm:$0xff] }
 0x53a   :  { %3890 = vmatprep.subr.bf16.mxu1 %v4281_v21  ;;  %v3897_v38 = vpack.c.bf16 %v2680_v22, %v2679_v2  ;;  %v2874_v2 = vld [vmem:[#allocation14 + $0x48] sm:$0xff] }
 0x53b   :  { %v2505_v36 = vpop.f32.mrb[24].mxu0 }
 0x53c   :  { %3427 = vmatmul.mubr.msk.f32.vlgmr.msra.gmra.mrb[20].mxu1 %vm1943_vm3, %v3025_v1  ;;  %3408 = vmatmul.mubr.f32.vlgmr.msra.gmra.mrb[26].mxu0 %v2505_v36  ;;  %v3374_v14 = vpop.f32.mrb[25].mxu0  ;;  %v3942_v1 = vpack.c.bf16 %v2868_v10, %v2867_v9  ;;  %v2872_v36 = vld [vmem:[#allocation14 + $0x38] sm:$0xff] }
 0x53d   :  { %3892 = vmatpush3.bf16.msra.mxu1 %v3891_v13  ;;  %3461 = vmatprep.mubr.msk.f32.mxu1 %vm4282_vm1, %v4782_v8  ;;  %v2870_v13 = vld [vmem:[#allocation14 + $0x28] sm:$0xff]  ;;  %v3948_v14 = vpack.c.bf16 %v2872_v36, %v2871_v12 }
 0x53e   :  { %3893 = vmatprep.subr.bf16.mxu1 %v4281_v21  ;;  %3496 = vmatprep.mubr.msk.f32.mxu0 %vm4282_vm1, %v4782_v8 }
 0x53f   :  { %3916 = vmatpush3.bf16.msra.mxu0 %v3915_v43  ;;  %v3029_v43 = vld [vmem:[%s4857_s10] ss:$0 sm:$0xff] }
 0x540   :  { %3917 = vmatprep.subr.bf16.mxu0 %v4281_v21 }
 0x541   :  { %3895 = vmatpush3.bf16.msra.mxu1 %v3894_v15  ;;  %v2873_v15 = vld [vmem:[#allocation14 + $0x40] sm:$0xff] }
 0x542   :  { %3896 = vmatprep.subr.bf16.mxu1 %v4281_v21  ;;  %v3951_v22 = vpack.c.bf16 %v2874_v2, %v2873_v15 }
 0x543   :  { %3919 = vmatpush3.bf16.msra.mxu0 %v3918_v45 }
 0x544   :  { %3920 = vmatprep.subr.bf16.mxu0 %v4281_v21 }
 0x545   :  { %3898 = vmatpush3.bf16.msra.mxu1 %v3897_v38  ;;  %v2875_v38 = vld [vmem:[#allocation14 + $0x50] sm:$0xff] }
 0x546   :  { %3899 = vmatprep.subr.bf16.mxu1 %v4281_v21  ;;  %v3954_v19 = vpack.c.bf16 %v2876_v18, %v2875_v38 }
 0x547   :  { %3922 = vmatpush3.bf16.msra.mxu0 %v3921_v48 }
 0x548   :  { %3923 = vmatprep.subr.bf16.mxu0 %v4281_v21 }
 0x549   :  { %3901 = vmatpush3.bf16.msra.mxu1 %v3900_v20  ;;  %v2877_v20 = vld [vmem:[#allocation14 + $0x60] sm:$0xff] }
 0x54a   :  { %3902 = vmatprep.subr.bf16.mxu1 %v4281_v21  ;;  %v3957_v35 = vpack.c.bf16 %v2878_v34, %v2877_v20 }
 0x54b   :  { %3925 = vmatpush3.bf16.msra.mxu0 %v3924_v51 }
 0x54c   :  { %3926 = vmatprep.subr.bf16.mxu0 %v4281_v21 }
 0x54d   :  { %3904 = vmatpush3.bf16.msra.mxu1 %v3903_v23 }
 0x54e   :  { %3905 = vmatprep.subr.bf16.mxu1 %v4281_v21 }
 0x54f   :  { %3928 = vmatpush3.bf16.msra.mxu0 %v3927_v54 }
 0x550   :  { %3929 = vmatprep.subr.bf16.mxu0 %v4281_v21 }
 0x551   :  { %3907 = vmatpush3.bf16.msra.mxu1 %v3906_v27 }
 0x552   :  { %3908 = vmatprep.subr.bf16.mxu1 %v4281_v21 }
 0x553   :  { %3931 = vmatpush3.bf16.msra.mxu0 %v3930_v56 }
 0x554   :  { %3932 = vmatprep.subr.bf16.mxu0 %v4281_v21 }
 0x555   :  { %3910 = vmatpush3.bf16.msra.mxu1 %v3909_v0  ;;  %v2879_v0 = vld [vmem:[#allocation14 + $0x70] sm:$0xff] }
 0x556   :  { %3911 = vmatprep.subr.bf16.mxu1 %v4281_v21  ;;  %v3960_v32 = vpack.c.bf16 %v2880_v31, %v2879_v0 }
 0x557   :  { %3934 = vmatpush3.bf16.msra.mxu0 %v3933_v62 }
 0x558   :  { %3935 = vmatprep.subr.bf16.mxu0 %v4281_v21 }
 0x559   :  { %3913 = vmatpush3.bf16.msra.mxu1 %v3912_v33  ;;  %v3028_v33 = vld [vmem:[%s4855_s8] ss:$0 sm:$0xff] }
 0x55a   :  { %3938 = vmatprep.subr.bf16.mxu1 %v4281_v21 }
 0x55b   :  { %3937 = vmatpush3.bf16.msra.mxu0 %v3936_v6 }
 0x5ff   :  { %v2427_v30 = vpop.f32.mrb[18].mxu1 }
 0x600   :  { %v2431_v50 = vadd.f32 %v2427_v30, %v4779_v4  ;;  %v3355_v59 = vpop.f32.mrb[19].mxu1  ;;  %v2865_v4 = vld [vmem:[#allocation14] sm:$0xff] }
 0x601   :  { %v3939_v17 = vpack.c.bf16 %v2866_v7, %v2865_v4 }
 0x60f   :  { %v2670_v5 = vpop.f32.mrb[20].mxu1  ;;  %v2592_v16 = vpop.f32.mrb[26].mxu0 }
 0x610   :  { %v2596_v57 = vadd.f32 %v2592_v16, %v2431_v50  ;;  %3462 = vmatmul.mubr.f32.vlgmr.msra.gmra.mrb[22].mxu1 %v2670_v5  ;;  %v3428_v58 = vpop.f32.mrb[21].mxu1  ;;  %v3409_v40 = vpop.f32.mrb[27].mxu0 }
 0x611   :  { %3531 = vmatprep.mubr.msk.f32.mxu1 %vm4282_vm1, %v4782_v8  ;;  %3940 = vmatpush3.bf16.msra.mxu1 %v3939_v17  ;;  %v2869_v8 = vld [vmem:[#allocation14 + $0x20] sm:$0xff] }
 0x612   :  { %3941 = vmatprep.subr.bf16.mxu1 %v4281_v21  ;;  %v3945_v11 = vpack.c.bf16 %v2870_v13, %v2869_v8 }
 0x615   :  { %3943 = vmatpush3.bf16.msra.mxu1 %v3942_v1 }
 0x616   :  { %3944 = vmatprep.subr.bf16.mxu1 %v4281_v21 }
 0x619   :  { %3946 = vmatpush3.bf16.msra.mxu1 %v3945_v11 }
 0x61a   :  { %3947 = vmatprep.subr.bf16.mxu1 %v4281_v21 }
 0x61d   :  { %3949 = vmatpush3.bf16.msra.mxu1 %v3948_v14 }
 0x61e   :  { %3950 = vmatprep.subr.bf16.mxu1 %v4281_v21 }
 0x621   :  { %3952 = vmatpush3.bf16.msra.mxu1 %v3951_v22 }
 0x622   :  { %3953 = vmatprep.subr.bf16.mxu1 %v4281_v21 }
 0x625   :  { %3955 = vmatpush3.bf16.msra.mxu1 %v3954_v19 }
 0x626   :  { %3956 = vmatprep.subr.bf16.mxu1 %v4281_v21 }
 0x629   :  { %3958 = vmatpush3.bf16.msra.mxu1 %v3957_v35 }
 0x62a   :  { %3959 = vmatprep.subr.bf16.mxu1 %v4281_v21 }
 0x62d   :  { %3961 = vmatpush3.bf16.msra.mxu1 %v3960_v32 }
 0x6e3   :  { %v2757_v23 = vpop.f32.mrb[22].mxu1 }
 0x6e4   :  { %v2761_v26 = vadd.f32 %v2757_v23, %v2596_v57  ;;  %v3463_v27 = vpop.f32.mrb[23].mxu1 }
 0x6e6   :  { %v2769_v28 = vadd.f32 %v3027_v24, %v2761_v26 }
 0x6e8   :  { %v2770_v29 = vmax.f32 %v2769_v28, 0.0 }
 0x6ea   :  { %3497 = vmatmul.mubr.f32.vlgmr.msra.gmra.mrb[28].mxu0 %v2770_v29 }
 0x7bd   :  { %v2860_v37 = vpop.f32.mrb[28].mxu0 }
 0x7be   :  { %v2861_v21 = vadd.f32 %v3028_v33, %v2860_v37  ;;  %v3498_v41 = vpop.f32.mrb[29].mxu0 }
 0x7c0   :  { %v2864_v42 = vmax.f32 %v2861_v21, 0.0 }
 0x7c2   :  { %3532 = vmatmul.mubr.f32.vlgmr.msra.gmra.mrb[24].mxu1 %v2864_v42 }
 0x895   :  { %v2954_v44 = vpop.f32.mrb[24].mxu1 }
 0x896   :  { %v2955_v45 = vadd.f32 %v3029_v43, %v2954_v44  ;;  %v3533_v46 = vpop.f32.mrb[25].mxu1 }
 0x898   :  { %2958 = vst [vmem:[#allocation16] sm:$0x3] %v2955_v45 }
 0x899   :  { %4249 = shalt.err (!%p4246_p10)
}
 0x89a   :  { %s4250_s3 = scalar_lea.hbm %s4858_s11, 32 }
 0x89b   :  { %p4251_p11 = scmp.ne.s32.totalorder %s4858_s11, %s4250_s3  ;;  %p4254_p12 = scmp.lt.u32.totalorder %s4250_s3, %s4858_s11 }
 0x89d   :  { %p4256_p13 = pnand %p4254_p12, %p4251_p11 }
 0x89f   :  { %4259 = shalt.err (!%p4256_p13)
}
 0x8a0   :  { %2968 = dma.vmem_to_hbm [thread:$0]  %s2966_s23, 32, %s4858_s11, [#allocation7]  }
 0x8a1   :  { %4268 = dma.done.wait [#allocation7], 32  }
 0x8a2   :  { %4269 = vsyncadd [#allocation7], 4294967264 }
 0x8a3   :  { %2972 = vsyncpa [#allocation6], 1 }
 0x8a4   :  { %2973 = vsyncpa [#allocation9], 1 }
 0x8a5   :  { %2974 = vsyncpa [#allocation12], 1 }
 0x8a6   :  { %2975 = vsyncpa [#allocation15], 1 }
 0x8a7   :  { %2976 = vsyncpa [#allocation7], 1 }

</bundles_post_ra>
